<compile_context>
chip_gen: v7x
topology: tpu7x:2x2x1
jax: 0.10.0
libtpu: 0.0.40
codegen_flags: <defaults>
</compile_context>

<pallas_src>
import jax
import jax.numpy as jnp
from jax.experimental import pallas as pl
from jax.experimental.pallas import tpu as pltpu

# --- architecture constants (from QNetwork.get_architecture) -----------------
ROWS, COLS = 17, 17
N_CHANNELS = 6                         # field, coins, agents, bombs, bomb-possible, explosions
INPUT_DIM = N_CHANNELS * ROWS * COLS   # 1734
ACTIONS = ("UP", "RIGHT", "DOWN", "LEFT", "WAIT", "BOMB")
OUTPUT_DIM = len(ACTIONS)              # 6
N_FEATURES = [INPUT_DIM, 300, 100, 50, 20, OUTPUT_DIM]

_LANE = 128


def _round_up(x: int, m: int) -> int:
  return (x + m - 1) // m * m


_D0_PAD = _round_up(INPUT_DIM, _LANE)   # 1792
_TB_MAX = 512                           # max batch-tile rows (replay-buffer batches)
_SINGLE_TILE_MAX = 128                  # below this: one full-batch tile


# --- Pallas kernel: the whole MLP for one batch tile --------------------------
def _mlp_kernel(x_ref,
                w0_ref, b0_ref,
                w1_ref, b1_ref,
                w2_ref, b2_ref,
                w3_ref, b3_ref,
                w4_ref, b4_ref,
                out_ref,
                h0_ref):
  """MLP forward for one (TB, INPUT_DIM) f32 batch tile.

  x_ref:  (TB, 1734)        f32  (streamed straight from HBM)
  wi_ref: (Di_p, Di+1_p)    bf16 (pre-transposed in x out, zero padded)
  bi_ref: (1, Di+1_p)       f32
  out_ref:(TB, OUTPUT_DIM)  f32  (only the 6 real action columns hit HBM)
  h0_ref: (TB, 1792)        bf16 VMEM scratch (zero-padded bf16 copy of x tile)
  """
  tb = h0_ref.shape[0]
  # Zero the padded K tail every step: the scratch is per-core, and with the
  # batch axis marked "parallel" (v7x megacore) a program_id==0 guard would
  # skip the second TensorCore's scratch.
  h0_ref[:, INPUT_DIM:_D0_PAD] = jnp.zeros((tb, _D0_PAD - INPUT_DIM), jnp.bfloat16)
  # In-kernel f32 -> bf16 cast; x is read from HBM exactly once, as f32.
  h0_ref[:, :INPUT_DIM] = x_ref[...].astype(jnp.bfloat16)

  def layer(h_bf16, w_ref, b_ref, relu):
    acc = jnp.dot(h_bf16, w_ref[...], preferred_element_type=jnp.float32)
    acc = acc + b_ref[...]
    if relu:
      acc = jnp.maximum(acc, 0.0)
    return acc

  h = layer(h0_ref[...], w0_ref, b0_ref, True).astype(jnp.bfloat16)
  h = layer(h, w1_ref, b1_ref, True).astype(jnp.bfloat16)
  h = layer(h, w2_ref, b2_ref, True).astype(jnp.bfloat16)
  h = layer(h, w3_ref, b3_ref, True).astype(jnp.bfloat16)
  q = layer(h, w4_ref, b4_ref, False)            # (TB, 128) f32, final Linear
  out_ref[...] = q[:, :OUTPUT_DIM]               # narrow (TB, 6) writeback


# --- one-time parameter preparation (NOT in the per-step hot path) ------------
def prepare_params(weights, biases):
  """Pad, transpose and cast the PyTorch-layout params once.

  weights[i]: (f_out, f_in) f32 (torch layout); biases[i]: (f_out,) f32.
  Returns bf16 (f_in_p, f_out_p) weights and f32 (1, f_out_p) biases.
  """
  dims = [weights[0].shape[1]] + [w.shape[0] for w in weights]
  dims_p = [_round_up(d, _LANE) for d in dims]
  w_p, b_p = [], []
  for i, (w, b) in enumerate(zip(weights, biases)):
    f_out, f_in = w.shape
    wt = jnp.zeros((dims_p[i], dims_p[i + 1]), jnp.bfloat16)
    wt = wt.at[:f_in, :f_out].set(jnp.asarray(w).T.astype(jnp.bfloat16))
    bb = jnp.zeros((1, dims_p[i + 1]), jnp.float32)
    bb = bb.at[0, :f_out].set(jnp.asarray(b).astype(jnp.float32))
    w_p.append(wt)
    b_p.append(bb)
  return {"w": tuple(w_p), "b": tuple(b_p),
          "in_dim": int(dims[0]), "out_dim": int(dims[-1])}


def _pick_tb(batch: int) -> int:
  """Batch-tile rows. Single full-batch tile for small B (always layout-legal
  since block dim == array dim); otherwise >=2 tiles so both v7x TensorCores
  get work, capped at _TB_MAX and 8-row aligned (f32 sublane)."""
  if batch <= _SINGLE_TILE_MAX:
    return batch
  return min(_TB_MAX, _round_up((batch + 1) // 2, 8))


# --- forward: batch-tiled pallas_call, no host-side pad/cast -------------------
@jax.jit
def _forward(x, w_p, b_p):
  B = x.shape[0]
  TB = _pick_tb(B)
  grid = (pl.cdiv(B, TB),)

  # x / out tiled over batch; weights & biases pinned via constant index maps
  # (fetched once, VMEM-resident across grid steps).
  in_specs = [pl.BlockSpec((TB, INPUT_DIM), lambda i: (i, 0))]
  flat_params = []
  for w, b in zip(w_p, b_p):
    in_specs.append(pl.BlockSpec(w.shape, lambda i: (0, 0)))
    in_specs.append(pl.BlockSpec(b.shape, lambda i: (0, 0)))
    flat_params += [w, b]
  out_spec = pl.BlockSpec((TB, OUTPUT_DIM), lambda i: (i, 0))

  macs = sum(fi * fo for fi, fo in zip(N_FEATURES[:-1], N_FEATURES[1:]))
  param_bytes = (sum(int(w.size) * 2 for w in w_p)
                 + sum(int(b.size) * 4 for b in b_p))
  cost = pl.CostEstimate(
      flops=2 * B * macs,
      transcendentals=0,
      bytes_accessed=B * (INPUT_DIM * 4 + OUTPUT_DIM * 4) + param_bytes)

  return pl.pallas_call(
      _mlp_kernel,
      out_shape=jax.ShapeDtypeStruct((B, OUTPUT_DIM), jnp.float32),
      grid=grid,
      in_specs=in_specs,
      out_specs=out_spec,
      scratch_shapes=[pltpu.VMEM((TB, _D0_PAD), jnp.bfloat16)],
      compiler_params=pltpu.CompilerParams(
          dimension_semantics=("parallel",),   # megacore split on v7x
          vmem_limit_bytes=32 << 20,           # kernel peaks well below this
      ),
      cost_estimate=cost,
  )(x, *flat_params)


def qnetwork_forward(x, params):
  """x: (B, INPUT_DIM) f32; params: output of prepare_params."""
  # NOTE: bucket batch sizes upstream if B varies a lot (each distinct B
  # retraces/recompiles, as with any shape-specialized jit).
  return _forward(x, params["w"], params["b"])


# --- parameter init (matches _init_weights: N(0,1) W, zero bias) --------------
def init_params(key):
  weights, biases = [], []
  for f_in, f_out in zip(N_FEATURES[:-1], N_FEATURES[1:]):
    key, sub = jax.random.split(key)
    weights.append(jax.random.normal(sub, (f_out, f_in), jnp.float32))  # torch layout
    biases.append(jnp.zeros((f_out,), jnp.float32))
  return weights, biases


# --- pure-JAX reference mirroring the kernel's numerics (bf16 ops, f32 acc) ----
def reference_forward(x, weights, biases):
  h = x.astype(jnp.bfloat16)
  n = len(weights)
  for i, (w, b) in enumerate(zip(weights, biases)):
    acc = jnp.dot(h, w.T.astype(jnp.bfloat16),
                  preferred_element_type=jnp.float32)
    acc = acc + b.astype(jnp.float32)
    if i != n - 1:
      h = jnp.maximum(acc, 0.0).astype(jnp.bfloat16)
    else:
      h = acc
  return h


if __name__ == "__main__":
  key = jax.random.PRNGKey(0)
  k_x, k_p, k_b = jax.random.split(key, 3)

  weights, biases = init_params(k_p)
  # exercise the bias path in the self-test (module init zeroes biases)
  bkeys = jax.random.split(k_b, len(biases))
  biases = [jax.random.normal(bk, b.shape, jnp.float32)
            for bk, b in zip(bkeys, biases)]

  params = prepare_params(weights, biases)   # one-time prep, outside hot path

  def check(batch, kx):
    x = jax.random.normal(kx, (batch, INPUT_DIM), jnp.float32)
    out = jax.block_until_ready(qnetwork_forward(x, params))
    ref = reference_forward(x, weights, biases)
    assert out.shape == (batch, OUTPUT_DIM), out.shape
    # kernel and reference share the same bf16 quantization; only f32
    # accumulation-order differences remain.
    err = float(jnp.max(jnp.abs(out - ref)) / jnp.max(jnp.abs(ref)))
    assert err < 5e-2, f"mismatch at batch={batch}: rel err {err}"

  kx1, kx2 = jax.random.split(k_x)
  check(2, kx1)      # tiny acting batch: single full-batch tile, unaligned rows
  check(300, kx2)    # replay-buffer batch: 2 tiles (152 + partial), megacore path

  print("KERNEL_OK")
</pallas_src>

<mosaic_0001>
module attributes {stable_mosaic.version = 11 : i64} {
  func.func @_mlp_kernel(%arg0: i32, %arg1: memref<2x1734xf32, #tpu.memory_space<vmem>>, %arg2: memref<1792x384xbf16, #tpu.memory_space<vmem>>, %arg3: memref<1x384xf32, #tpu.memory_space<vmem>>, %arg4: memref<384x128xbf16, #tpu.memory_space<vmem>>, %arg5: memref<1x128xf32, #tpu.memory_space<vmem>>, %arg6: memref<128x128xbf16, #tpu.memory_space<vmem>>, %arg7: memref<1x128xf32, #tpu.memory_space<vmem>>, %arg8: memref<128x128xbf16, #tpu.memory_space<vmem>>, %arg9: memref<1x128xf32, #tpu.memory_space<vmem>>, %arg10: memref<128x128xbf16, #tpu.memory_space<vmem>>, %arg11: memref<1x128xf32, #tpu.memory_space<vmem>>, %arg12: memref<2x6xf32, #tpu.memory_space<vmem>>, %arg13: memref<2x1792xbf16, #tpu.memory_space<vmem>>) attributes {dimension_semantics = [#tpu.dimension_semantics<parallel>], iteration_bounds = array<i64: 1>, scalar_prefetch = 0 : i64, scratch_operands = 1 : i64, tpu.core_type = #tpu.core_type<tc>, window_params = [{transform_indices = @transform_0, window_bounds = array<i64: 2, 1734>}, {pipeline_mode = #tpu.pipeline_mode<synchronous>, transform_indices = @transform_1, window_bounds = array<i64: 1792, 384>}, {pipeline_mode = #tpu.pipeline_mode<synchronous>, transform_indices = @transform_2, window_bounds = array<i64: 1, 384>}, {pipeline_mode = #tpu.pipeline_mode<synchronous>, transform_indices = @transform_3, window_bounds = array<i64: 384, 128>}, {pipeline_mode = #tpu.pipeline_mode<synchronous>, transform_indices = @transform_4, window_bounds = array<i64: 1, 128>}, {pipeline_mode = #tpu.pipeline_mode<synchronous>, transform_indices = @transform_5, window_bounds = array<i64: 128, 128>}, {pipeline_mode = #tpu.pipeline_mode<synchronous>, transform_indices = @transform_6, window_bounds = array<i64: 1, 128>}, {pipeline_mode = #tpu.pipeline_mode<synchronous>, transform_indices = @transform_7, window_bounds = array<i64: 128, 128>}, {pipeline_mode = #tpu.pipeline_mode<synchronous>, transform_indices = @transform_8, window_bounds = array<i64: 1, 128>}, {pipeline_mode = #tpu.pipeline_mode<synchronous>, transform_indices = @transform_9, window_bounds = array<i64: 128, 128>}, {pipeline_mode = #tpu.pipeline_mode<synchronous>, transform_indices = @transform_10, window_bounds = array<i64: 1, 128>}, {transform_indices = @transform_11, window_bounds = array<i64: 2, 6>}]} {
    %cst = arith.constant 0.000000e+00 : bf16
    %0 = vector.broadcast %cst : bf16 to vector<2x58xbf16>
    %c0 = arith.constant 0 : index
    %c1734 = arith.constant 1734 : index
    %1 = vector.load %arg13[%c0, %c1734] : memref<2x1792xbf16, #tpu.memory_space<vmem>>, vector<2x58xbf16>
    tpu.vector_store %arg13[%c0, %c1734], %0 {strides = array<i32>} : memref<2x1792xbf16, #tpu.memory_space<vmem>>, vector<2x58xbf16>,
    %c0_0 = arith.constant 0 : index
    %c0_1 = arith.constant 0 : index
    %2 = vector.load %arg1[%c0_0, %c0_1] : memref<2x1734xf32, #tpu.memory_space<vmem>>, vector<2x1734xf32>
    %3 = arith.truncf %2 : vector<2x1734xf32> to vector<2x1734xbf16>
    %c0_2 = arith.constant 0 : index
    %c0_3 = arith.constant 0 : index
    %4 = vector.load %arg13[%c0_2, %c0_3] : memref<2x1792xbf16, #tpu.memory_space<vmem>>, vector<2x1734xbf16>
    tpu.vector_store %arg13[%c0_2, %c0_3], %3 {strides = array<i32>} : memref<2x1792xbf16, #tpu.memory_space<vmem>>, vector<2x1734xbf16>,
    %c0_4 = arith.constant 0 : index
    %c0_5 = arith.constant 0 : index
    %5 = vector.load %arg13[%c0_4, %c0_5] : memref<2x1792xbf16, #tpu.memory_space<vmem>>, vector<2x1792xbf16>
    %c0_6 = arith.constant 0 : index
    %c0_7 = arith.constant 0 : index
    %6 = vector.load %arg2[%c0_6, %c0_7] : memref<1792x384xbf16, #tpu.memory_space<vmem>>, vector<1792x384xbf16>
    %cst_8 = arith.constant dense<0.000000e+00> : vector<2x384xf32>
    %7 = tpu.matmul %5, %6, %cst_8 {dimension_numbers = #tpu.dot_dimension_numbers<[1], [0], [0], [1], [0, 0, 1, 1], [], []>} : vector<2x1792xbf16>, vector<1792x384xbf16>, vector<2x384xf32> -> vector<2x384xf32>
    %c0_9 = arith.constant 0 : index
    %c0_10 = arith.constant 0 : index
    %8 = vector.load %arg3[%c0_9, %c0_10] : memref<1x384xf32, #tpu.memory_space<vmem>>, vector<1x384xf32>
    %9 = vector.broadcast %8 : vector<1x384xf32> to vector<2x384xf32>
    %10 = arith.addf %7, %9 : vector<2x384xf32>
    %cst_11 = arith.constant 0.000000e+00 : f32
    %11 = vector.broadcast %cst_11 : f32 to vector<2x384xf32>
    %12 = arith.maximumf %10, %11 : vector<2x384xf32>
    %13 = arith.truncf %12 : vector<2x384xf32> to vector<2x384xbf16>
    %c0_12 = arith.constant 0 : index
    %c0_13 = arith.constant 0 : index
    %14 = vector.load %arg4[%c0_12, %c0_13] : memref<384x128xbf16, #tpu.memory_space<vmem>>, vector<384x128xbf16>
    %cst_14 = arith.constant dense<0.000000e+00> : vector<2x128xf32>
    %15 = tpu.matmul %13, %14, %cst_14 {dimension_numbers = #tpu.dot_dimension_numbers<[1], [0], [0], [1], [0, 0, 1, 1], [], []>} : vector<2x384xbf16>, vector<384x128xbf16>, vector<2x128xf32> -> vector<2x128xf32>
    %c0_15 = arith.constant 0 : index
    %c0_16 = arith.constant 0 : index
    %16 = vector.load %arg5[%c0_15, %c0_16] : memref<1x128xf32, #tpu.memory_space<vmem>>, vector<1x128xf32>
    %17 = vector.broadcast %16 : vector<1x128xf32> to vector<2x128xf32>
    %18 = arith.addf %15, %17 : vector<2x128xf32>
    %cst_17 = arith.constant 0.000000e+00 : f32
    %19 = vector.broadcast %cst_17 : f32 to vector<2x128xf32>
    %20 = arith.maximumf %18, %19 : vector<2x128xf32>
    %21 = arith.truncf %20 : vector<2x128xf32> to vector<2x128xbf16>
    %c0_18 = arith.constant 0 : index
    %c0_19 = arith.constant 0 : index
    %22 = vector.load %arg6[%c0_18, %c0_19] : memref<128x128xbf16, #tpu.memory_space<vmem>>, vector<128x128xbf16>
    %cst_20 = arith.constant dense<0.000000e+00> : vector<2x128xf32>
    %23 = tpu.matmul %21, %22, %cst_20 {dimension_numbers = #tpu.dot_dimension_numbers<[1], [0], [0], [1], [0, 0, 1, 1], [], []>} : vector<2x128xbf16>, vector<128x128xbf16>, vector<2x128xf32> -> vector<2x128xf32>
    %c0_21 = arith.constant 0 : index
    %c0_22 = arith.constant 0 : index
    %24 = vector.load %arg7[%c0_21, %c0_22] : memref<1x128xf32, #tpu.memory_space<vmem>>, vector<1x128xf32>
    %25 = vector.broadcast %24 : vector<1x128xf32> to vector<2x128xf32>
    %26 = arith.addf %23, %25 : vector<2x128xf32>
    %cst_23 = arith.constant 0.000000e+00 : f32
    %27 = vector.broadcast %cst_23 : f32 to vector<2x128xf32>
    %28 = arith.maximumf %26, %27 : vector<2x128xf32>
    %29 = arith.truncf %28 : vector<2x128xf32> to vector<2x128xbf16>
    %c0_24 = arith.constant 0 : index
    %c0_25 = arith.constant 0 : index
    %30 = vector.load %arg8[%c0_24, %c0_25] : memref<128x128xbf16, #tpu.memory_space<vmem>>, vector<128x128xbf16>
    %cst_26 = arith.constant dense<0.000000e+00> : vector<2x128xf32>
    %31 = tpu.matmul %29, %30, %cst_26 {dimension_numbers = #tpu.dot_dimension_numbers<[1], [0], [0], [1], [0, 0, 1, 1], [], []>} : vector<2x128xbf16>, vector<128x128xbf16>, vector<2x128xf32> -> vector<2x128xf32>
    %c0_27 = arith.constant 0 : index
    %c0_28 = arith.constant 0 : index
    %32 = vector.load %arg9[%c0_27, %c0_28] : memref<1x128xf32, #tpu.memory_space<vmem>>, vector<1x128xf32>
    %33 = vector.broadcast %32 : vector<1x128xf32> to vector<2x128xf32>
    %34 = arith.addf %31, %33 : vector<2x128xf32>
    %cst_29 = arith.constant 0.000000e+00 : f32
    %35 = vector.broadcast %cst_29 : f32 to vector<2x128xf32>
    %36 = arith.maximumf %34, %35 : vector<2x128xf32>
    %37 = arith.truncf %36 : vector<2x128xf32> to vector<2x128xbf16>
    %c0_30 = arith.constant 0 : index
    %c0_31 = arith.constant 0 : index
    %38 = vector.load %arg10[%c0_30, %c0_31] : memref<128x128xbf16, #tpu.memory_space<vmem>>, vector<128x128xbf16>
    %cst_32 = arith.constant dense<0.000000e+00> : vector<2x128xf32>
    %39 = tpu.matmul %37, %38, %cst_32 {dimension_numbers = #tpu.dot_dimension_numbers<[1], [0], [0], [1], [0, 0, 1, 1], [], []>} : vector<2x128xbf16>, vector<128x128xbf16>, vector<2x128xf32> -> vector<2x128xf32>
    %c0_33 = arith.constant 0 : index
    %c0_34 = arith.constant 0 : index
    %40 = vector.load %arg11[%c0_33, %c0_34] : memref<1x128xf32, #tpu.memory_space<vmem>>, vector<1x128xf32>
    %41 = vector.broadcast %40 : vector<1x128xf32> to vector<2x128xf32>
    %42 = arith.addf %39, %41 : vector<2x128xf32>
    %43 = vector.extract_strided_slice %42 {offsets = [0, 0], sizes = [2, 6], strides = [1, 1]} : vector<2x128xf32> to vector<2x6xf32>
    %c0_35 = arith.constant 0 : index
    %c0_36 = arith.constant 0 : index
    %44 = vector.load %arg12[%c0_35, %c0_36] : memref<2x6xf32, #tpu.memory_space<vmem>>, vector<2x6xf32>
    tpu.vector_store %arg12[%c0_35, %c0_36], %43 {strides = array<i32>} : memref<2x6xf32, #tpu.memory_space<vmem>>, vector<2x6xf32>,
    return
  }
  func.func @transform_0(%arg0: i32) -> (i32, i32) {
    %c0_i32 = arith.constant 0 : i32
    %c0_i32_0 = arith.constant 0 : i32
    return %arg0, %c0_i32 : i32, i32
  }
  func.func @transform_1(%arg0: i32) -> (i32, i32) {
    %c0_i32 = arith.constant 0 : i32
    %c0_i32_0 = arith.constant 0 : i32
    %c0_i32_1 = arith.constant 0 : i32
    return %c0_i32, %c0_i32_0 : i32, i32
  }
  func.func @transform_2(%arg0: i32) -> (i32, i32) {
    %c0_i32 = arith.constant 0 : i32
    %c0_i32_0 = arith.constant 0 : i32
    %c0_i32_1 = arith.constant 0 : i32
    return %c0_i32, %c0_i32_0 : i32, i32
  }
  func.func @transform_3(%arg0: i32) -> (i32, i32) {
    %c0_i32 = arith.constant 0 : i32
    %c0_i32_0 = arith.constant 0 : i32
    %c0_i32_1 = arith.constant 0 : i32
    return %c0_i32, %c0_i32_0 : i32, i32
  }
  func.func @transform_4(%arg0: i32) -> (i32, i32) {
    %c0_i32 = arith.constant 0 : i32
    %c0_i32_0 = arith.constant 0 : i32
    %c0_i32_1 = arith.constant 0 : i32
    return %c0_i32, %c0_i32_0 : i32, i32
  }
  func.func @transform_5(%arg0: i32) -> (i32, i32) {
    %c0_i32 = arith.constant 0 : i32
    %c0_i32_0 = arith.constant 0 : i32
    %c0_i32_1 = arith.constant 0 : i32
    return %c0_i32, %c0_i32_0 : i32, i32
  }
  func.func @transform_6(%arg0: i32) -> (i32, i32) {
    %c0_i32 = arith.constant 0 : i32
    %c0_i32_0 = arith.constant 0 : i32
    %c0_i32_1 = arith.constant 0 : i32
    return %c0_i32, %c0_i32_0 : i32, i32
  }
  func.func @transform_7(%arg0: i32) -> (i32, i32) {
    %c0_i32 = arith.constant 0 : i32
    %c0_i32_0 = arith.constant 0 : i32
    %c0_i32_1 = arith.constant 0 : i32
    return %c0_i32, %c0_i32_0 : i32, i32
  }
  func.func @transform_8(%arg0: i32) -> (i32, i32) {
    %c0_i32 = arith.constant 0 : i32
    %c0_i32_0 = arith.constant 0 : i32
    %c0_i32_1 = arith.constant 0 : i32
    return %c0_i32, %c0_i32_0 : i32, i32
  }
  func.func @transform_9(%arg0: i32) -> (i32, i32) {
    %c0_i32 = arith.constant 0 : i32
    %c0_i32_0 = arith.constant 0 : i32
    %c0_i32_1 = arith.constant 0 : i32
    return %c0_i32, %c0_i32_0 : i32, i32
  }
  func.func @transform_10(%arg0: i32) -> (i32, i32) {
    %c0_i32 = arith.constant 0 : i32
    %c0_i32_0 = arith.constant 0 : i32
    %c0_i32_1 = arith.constant 0 : i32
    return %c0_i32, %c0_i32_0 : i32, i32
  }
  func.func @transform_11(%arg0: i32) -> (i32, i32) {
    %c0_i32 = arith.constant 0 : i32
    %c0_i32_0 = arith.constant 0 : i32
    return %arg0, %c0_i32 : i32, i32
  }
}

</mosaic_0001>

<bundles_post_ra>
// kernel: _forward.1
= control target key start
LH: loop header
LB: loop body
LE: loop exit
PB: predicated region body
PF: predicated region fallthrough
CT: control target
= control target key end

     0   :  { %16 = vsyncpa [#allocation4], 0  ;;  %s5903_s0 = inlined_call_operand.hbm [shape: f32[2,1734], index: 0, kind: input, shape index: {}]   ;;  %s5904_s1 = inlined_call_operand.hbm [shape: bf16[1792,384], index: 1, kind: input, shape index: {}]   ;;  %s5905_s2 = inlined_call_operand.hbm [shape: f32[1,384], index: 2, kind: input, shape index: {}]   ;;  %s5906_s3 = inlined_call_operand.hbm [shape: bf16[384,128], index: 3, kind: input, shape index: {}]   ;;  %s5907_s4 = inlined_call_operand.hbm [shape: f32[1,128], index: 4, kind: input, shape index: {}]   ;;  %s5908_s5 = inlined_call_operand.hbm [shape: bf16[128,128], index: 5, kind: input, shape index: {}]   ;;  %s5909_s6 = inlined_call_operand.hbm [shape: f32[1,128], index: 6, kind: input, shape index: {}]   ;;  %s5910_s7 = inlined_call_operand.hbm [shape: bf16[128,128], index: 7, kind: input, shape index: {}]   ;;  %s5911_s8 = inlined_call_operand.hbm [shape: f32[1,128], index: 8, kind: input, shape index: {}]   ;;  %s5912_s9 = inlined_call_operand.hbm [shape: bf16[128,128], index: 9, kind: input, shape index: {}]   ;;  %s5913_s10 = inlined_call_operand.hbm [shape: f32[1,128], index: 10, kind: input, shape index: {}]   ;;  %s5914_s11 = inlined_call_operand.hbm [shape: f32[2,6], index: 11, kind: output, shape index: {}]  }
   0x1   :  { %17 = vsyncpa [#allocation7], 0 }
   0x2   :  { %18 = vsyncpa [#allocation10], 0 }
   0x3   :  { %19 = vsyncpa [#allocation13], 0 }
   0x4   :  { %20 = vsyncpa [#allocation16], 0 }
   0x5   :  { %21 = vsyncpa [#allocation19], 0 }
   0x6   :  { %22 = vsyncpa [#allocation5], 0  ;;  %s5490_s17 = smov [#allocation6]   ;;  %s5212_s21 = scalar_lea.hbm %s5904_s1, 43008 }
   0x7   :  { %s38_s18 = sshll.u32 %s5490_s17, 4  ;;  %p5213_p0 = scmp.ne.s32.totalorder %s5904_s1, %s5212_s21  ;;  %s39_s18 = int_to_ptr.vmem [resolvable:$true] %s38_s18 }
   0x8   :  { %p5216_p1 = scmp.lt.u32.totalorder %s5212_s21, %s5904_s1 }
   0xa   :  { %p5218_p2 = pnand %p5216_p1, %p5213_p0 }
   0xc   :  { %5221 = shalt.err (!%p5218_p2)
}
   0xd   :  { %s5222_s26 = scalar_lea.vmem %s39_s18, 43008  ;;  %p5227_p4 = scmp.lt.s32.totalorder %s39_s18, %s39_s18 }
   0xe   :  { %p5223_p3 = scmp.ne.s32.totalorder %s39_s18, %s5222_s26  ;;  %p5228_p5 = scmp.lt.s32.totalorder %s5222_s26, %s5222_s26 }
  0x10   :  { %p5229_p6 = por %p5228_p5, %p5227_p4 }
  0x12   :  { %p5230_p7 = pnand %p5229_p6, %p5223_p3 }
  0x14   :  { %5233 = shalt.err (!%p5230_p7)
}
  0x15   :  { %s5491_s27 = smov 192   ;;  %s5492_s28 = smov 12  }
  0x16   :  { %44 = dma.hbm_to_vmem [thread:$0]  %s5904_s1, 43008, %s39_s18, [#allocation7], %s5491_s27, %s5491_s27, %s5492_s28  }
  0x17   :  { %s5493_s12 = smov [#allocation9]   ;;  %s5234_s16 = scalar_lea.hbm %s5906_s3, 3072 }
  0x18   :  { %s60_s13 = sshll.u32 %s5493_s12, 4  ;;  %p5235_p8 = scmp.ne.s32.totalorder %s5906_s3, %s5234_s16  ;;  %s61_s13 = int_to_ptr.vmem [resolvable:$true] %s60_s13 }
  0x19   :  { %p5238_p9 = scmp.lt.u32.totalorder %s5234_s16, %s5906_s3 }
  0x1b   :  { %p5240_p10 = pnand %p5238_p9, %p5235_p8 }
  0x1d   :  { %5243 = shalt.err (!%p5240_p10)
}
  0x1e   :  { %s5244_s22 = scalar_lea.vmem %s61_s13, 3072  ;;  %p5249_p12 = scmp.lt.s32.totalorder %s61_s13, %s61_s13 }
  0x1f   :  { %p5245_p11 = scmp.ne.s32.totalorder %s61_s13, %s5244_s22  ;;  %p5250_p13 = scmp.lt.s32.totalorder %s5244_s22, %s5244_s22 }
  0x21   :  { %p5251_p0 = por %p5250_p13, %p5249_p12 }
  0x23   :  { %p5252_p1 = pnand %p5251_p0, %p5245_p11 }
  0x25   :  { %5255 = shalt.err (!%p5252_p1)
}
  0x26   :  { %s5494_s1 = smov 64   ;;  %s5495_s18 = smov 4  }
  0x27   :  { %66 = dma.hbm_to_vmem [thread:$0]  %s5906_s3, 3072, %s61_s13, [#allocation10], %s5494_s1, %s5494_s1, %s5495_s18  }
  0x28   :  { %s5496_s25 = smov [#allocation12]   ;;  %s5497_s27 = smov [#allocation15]  }
  0x29   :  { %s82_s26 = sshll.u32 %s5496_s25, 4  ;;  %s104_s28 = sshll.u32 %s5497_s27, 4  ;;  %s83_s26 = int_to_ptr.vmem [resolvable:$true] %s82_s26  ;;  %s5598_s28 = int_to_ptr.vmem [resolvable:$true] %s104_s28 }
  0x2a   :  { %s5256_s12 = scalar_lea.hbm %s5908_s5, 1024 }
  0x2b   :  { %p5257_p2 = scmp.ne.s32.totalorder %s5908_s5, %s5256_s12  ;;  %p5260_p3 = scmp.lt.u32.totalorder %s5256_s12, %s5908_s5 }
  0x2d   :  { %p5262_p4 = pnand %p5260_p3, %p5257_p2 }
  0x2f   :  { %5265 = shalt.err (!%p5262_p4)
}
  0x30   :  { %s5266_s3 = scalar_lea.vmem %s83_s26, 1024  ;;  %p5271_p6 = scmp.lt.s32.totalorder %s83_s26, %s83_s26 }
  0x31   :  { %p5267_p5 = scmp.ne.s32.totalorder %s83_s26, %s5266_s3  ;;  %p5272_p7 = scmp.lt.s32.totalorder %s5266_s3, %s5266_s3 }
  0x33   :  { %p5273_p8 = por %p5272_p7, %p5271_p6 }
  0x35   :  { %p5274_p9 = pnand %p5273_p8, %p5267_p5 }
  0x37   :  { %5277 = shalt.err (!%p5274_p9)
}
  0x38   :  { %88 = dma.hbm_to_vmem [thread:$0]  %s5908_s5, 1024, %s83_s26, [#allocation13], %s5494_s1, %s5494_s1, %s5495_s18  }
  0x39   :  { %s5278_s22 = scalar_lea.hbm %s5910_s7, 1024 }
  0x3a   :  { %p5279_p10 = scmp.ne.s32.totalorder %s5910_s7, %s5278_s22  ;;  %p5282_p11 = scmp.lt.u32.totalorder %s5278_s22, %s5910_s7 }
  0x3c   :  { %p5284_p12 = pnand %p5282_p11, %p5279_p10 }
  0x3e   :  { %5287 = shalt.err (!%p5284_p12)
}
  0x3f   :  { %s5288_s29 = scalar_lea.vmem %s5598_s28, 1024  ;;  %p5293_p0 = scmp.lt.s32.totalorder %s5598_s28, %s5598_s28 }
  0x40   :  { %p5289_p13 = scmp.ne.s32.totalorder %s5598_s28, %s5288_s29  ;;  %p5294_p1 = scmp.lt.s32.totalorder %s5288_s29, %s5288_s29 }
  0x42   :  { %p5295_p2 = por %p5294_p1, %p5293_p0 }
  0x44   :  { %p5296_p3 = pnand %p5295_p2, %p5289_p13 }
  0x46   :  { %5299 = shalt.err (!%p5296_p3)
}
  0x47   :  { %110 = dma.hbm_to_vmem [thread:$0]  %s5910_s7, 1024, %s5598_s28, [#allocation16], %s5494_s1, %s5494_s1, %s5495_s18  }
  0x48   :  { %s5498_s30 = smov [#allocation18]   ;;  %s5499_s14 = smov [#allocation3]  }
  0x49   :  { %s126_s12 = sshll.u32 %s5498_s30, 4  ;;  %s29_s15 = sshll.u32 %s5499_s14, 4  ;;  %s127_s12 = int_to_ptr.vmem [resolvable:$true] %s126_s12  ;;  %s30_s15 = int_to_ptr.vmem [resolvable:$true] %s29_s15 }
  0x4a   :  { %s5300_s3 = scalar_lea.hbm %s5912_s9, 1024 }
  0x4b   :  { %p5301_p4 = scmp.ne.s32.totalorder %s5912_s9, %s5300_s3  ;;  %p5304_p5 = scmp.lt.u32.totalorder %s5300_s3, %s5912_s9 }
  0x4d   :  { %p5306_p6 = pnand %p5304_p5, %p5301_p4 }
  0x4f   :  { %5309 = shalt.err (!%p5306_p6)
}
  0x50   :  { %s5310_s7 = scalar_lea.vmem %s127_s12, 1024  ;;  %p5315_p8 = scmp.lt.s32.totalorder %s127_s12, %s127_s12 }
  0x51   :  { %p5311_p7 = scmp.ne.s32.totalorder %s127_s12, %s5310_s7  ;;  %p5316_p9 = scmp.lt.s32.totalorder %s5310_s7, %s5310_s7 }
  0x53   :  { %p5317_p10 = por %p5316_p9, %p5315_p8 }
  0x55   :  { %p5318_p11 = pnand %p5317_p10, %p5311_p7 }
  0x57   :  { %5321 = shalt.err (!%p5318_p11)
}
  0x58   :  { %132 = dma.hbm_to_vmem [thread:$0]  %s5912_s9, 1024, %s127_s12, [#allocation19], %s5494_s1, %s5494_s1, %s5495_s18  }
  0x59   :  { %s5322_s25 = scalar_lea.hbm %s5903_s0, 448 }
  0x5a   :  { %p5323_p12 = scmp.ne.s32.totalorder %s5903_s0, %s5322_s25  ;;  %p5326_p13 = scmp.lt.u32.totalorder %s5322_s25, %s5903_s0 }
  0x5c   :  { %p5328_p0 = pnand %p5326_p13, %p5323_p12 }
  0x5e   :  { %5331 = shalt.err (!%p5328_p0)
}
  0x5f   :  { %s5332_s30 = scalar_lea.vmem %s30_s15, 448  ;;  %p5337_p2 = scmp.lt.s32.totalorder %s30_s15, %s30_s15 }
  0x60   :  { %p5333_p1 = scmp.ne.s32.totalorder %s30_s15, %s5332_s30  ;;  %p5338_p3 = scmp.lt.s32.totalorder %s5332_s30, %s5332_s30 }
  0x62   :  { %p5339_p4 = por %p5338_p3, %p5337_p2 }
  0x64   :  { %p5340_p5 = pnand %p5339_p4, %p5333_p1 }
  0x66   :  { %5343 = shalt.err (!%p5340_p5)
}
  0x67   :  { %32 = dma.hbm_to_vmem [thread:$0]  %s5903_s0, 448, %s30_s15, [#allocation4]  }
  0x68   :  { %s5500_s18 = smov [#allocation8]   ;;  %s5501_s14 = smov [#allocation11]  }
  0x69   :  { %s51_s12 = sshll.u32 %s5500_s18, 4  ;;  %s73_s16 = sshll.u32 %s5501_s14, 4  ;;  %s52_s12 = int_to_ptr.vmem [resolvable:$true] %s51_s12  ;;  %s74_s16 = int_to_ptr.vmem [resolvable:$true] %s73_s16 }
  0x6a   :  { %s5344_s13 = scalar_lea.hbm %s5905_s2, 48 }
  0x6b   :  { %p5345_p6 = scmp.ne.s32.totalorder %s5905_s2, %s5344_s13  ;;  %p5348_p7 = scmp.lt.u32.totalorder %s5344_s13, %s5905_s2 }
  0x6d   :  { %p5350_p8 = pnand %p5348_p7, %p5345_p6 }
  0x6f   :  { %5353 = shalt.err (!%p5350_p8)
}
  0x70   :  { %s5354_s0 = scalar_lea.vmem %s52_s12, 48  ;;  %s5358_s15 = scalar_lea.vmem %s52_s12, 64 }
  0x71   :  { %p5355_p9 = scmp.ne.s32.totalorder %s52_s12, %s5354_s0  ;;  %p5359_p10 = scmp.lt.s32.totalorder %s52_s12, %s52_s12 }
  0x72   :  { %p5360_p11 = scmp.lt.s32.totalorder %s5358_s15, %s5354_s0 }
  0x74   :  { %p5361_p12 = por %p5360_p11, %p5359_p10 }
  0x76   :  { %p5362_p13 = pnand %p5361_p12, %p5355_p9 }
  0x78   :  { %5365 = shalt.err (!%p5362_p13)
}
  0x79   :  { %54 = dma.hbm_to_vmem [thread:$0]  %s5905_s2, 48, %s52_s12, [#allocation7]  }
  0x7a   :  { %s5366_s25 = scalar_lea.hbm %s5907_s4, 16 }
  0x7b   :  { %p5367_p0 = scmp.ne.s32.totalorder %s5907_s4, %s5366_s25  ;;  %p5370_p1 = scmp.lt.u32.totalorder %s5366_s25, %s5907_s4 }
  0x7d   :  { %p5372_p2 = pnand %p5370_p1, %p5367_p0 }
  0x7f   :  { %5375 = shalt.err (!%p5372_p2)
}
  0x80   :  { %s5376_s30 = scalar_lea.vmem %s74_s16, 16  ;;  %s5380_s9 = scalar_lea.vmem %s74_s16, 32 }
  0x81   :  { %p5377_p3 = scmp.ne.s32.totalorder %s74_s16, %s5376_s30  ;;  %p5381_p4 = scmp.lt.s32.totalorder %s74_s16, %s74_s16 }
  0x82   :  { %p5382_p5 = scmp.lt.s32.totalorder %s5380_s9, %s5376_s30 }
  0x84   :  { %p5383_p6 = por %p5382_p5, %p5381_p4 }
  0x86   :  { %p5384_p7 = pnand %p5383_p6, %p5377_p3 }
  0x88   :  { %5387 = shalt.err (!%p5384_p7)
}
  0x89   :  { %76 = dma.hbm_to_vmem [thread:$0]  %s5907_s4, 16, %s74_s16, [#allocation10]  }
  0x8a   :  { %s5502_s18 = smov [#allocation14]   ;;  %s5503_s14 = smov [#allocation17]  }
  0x8b   :  { %s95_s12 = sshll.u32 %s5502_s18, 4  ;;  %s117_s17 = sshll.u32 %s5503_s14, 4  ;;  %s96_s12 = int_to_ptr.vmem [resolvable:$true] %s95_s12  ;;  %s118_s17 = int_to_ptr.vmem [resolvable:$true] %s117_s17 }
  0x8c   :  { %s5388_s19 = scalar_lea.hbm %s5909_s6, 16 }
  0x8d   :  { %p5389_p8 = scmp.ne.s32.totalorder %s5909_s6, %s5388_s19  ;;  %p5392_p9 = scmp.lt.u32.totalorder %s5388_s19, %s5909_s6 }
  0x8f   :  { %p5394_p10 = pnand %p5392_p9, %p5389_p8 }
  0x91   :  { %5397 = shalt.err (!%p5394_p10)
}
  0x92   :  { %s5398_s4 = scalar_lea.vmem %s96_s12, 16  ;;  %s5402_s16 = scalar_lea.vmem %s96_s12, 32 }
  0x93   :  { %p5399_p11 = scmp.ne.s32.totalorder %s96_s12, %s5398_s4  ;;  %p5403_p12 = scmp.lt.s32.totalorder %s96_s12, %s96_s12 }
  0x94   :  { %p5404_p13 = scmp.lt.s32.totalorder %s5402_s16, %s5398_s4 }
  0x96   :  { %p5405_p0 = por %p5404_p13, %p5403_p12 }
  0x98   :  { %p5406_p1 = pnand %p5405_p0, %p5399_p11 }
  0x9a   :  { %5409 = shalt.err (!%p5406_p1)
}
  0x9b   :  { %98 = dma.hbm_to_vmem [thread:$0]  %s5909_s6, 16, %s96_s12, [#allocation13]  }
  0x9c   :  { %s5410_s24 = scalar_lea.hbm %s5911_s8, 16 }
  0x9d   :  { %p5411_p2 = scmp.ne.s32.totalorder %s5911_s8, %s5410_s24  ;;  %p5414_p3 = scmp.lt.u32.totalorder %s5410_s24, %s5911_s8 }
  0x9f   :  { %p5416_p4 = pnand %p5414_p3, %p5411_p2 }
  0xa1   :  { %5419 = shalt.err (!%p5416_p4)
}
  0xa2   :  { %s5420_s26 = scalar_lea.vmem %s118_s17, 16  ;;  %s5424_s30 = scalar_lea.vmem %s118_s17, 32 }
  0xa3   :  { %p5421_p5 = scmp.ne.s32.totalorder %s118_s17, %s5420_s26  ;;  %p5425_p6 = scmp.lt.s32.totalorder %s118_s17, %s118_s17 }
  0xa4   :  { %p5426_p7 = scmp.lt.s32.totalorder %s5424_s30, %s5420_s26 }
  0xa6   :  { %p5427_p8 = por %p5426_p7, %p5425_p6 }
  0xa8   :  { %p5428_p9 = pnand %p5427_p8, %p5421_p5 }
  0xaa   :  { %5431 = shalt.err (!%p5428_p9)
}
  0xab   :  { %120 = dma.hbm_to_vmem [thread:$0]  %s5911_s8, 16, %s118_s17, [#allocation16]  }
  0xac   :  { %s5504_s2 = smov [#allocation20]   ;;  %s5432_s14 = scalar_lea.hbm %s5913_s10, 16 }
  0xad   :  { %s139_s1 = sshll.u32 %s5504_s2, 4  ;;  %p5433_p10 = scmp.ne.s32.totalorder %s5913_s10, %s5432_s14  ;;  %s140_s1 = int_to_ptr.vmem [resolvable:$true] %s139_s1 }
  0xae   :  { %p5436_p11 = scmp.lt.u32.totalorder %s5432_s14, %s5913_s10 }
  0xb0   :  { %p5438_p12 = pnand %p5436_p11, %p5433_p10 }
  0xb2   :  { %5441 = shalt.err (!%p5438_p12)
}
  0xb3   :  { %s5442_s21 = scalar_lea.vmem %s140_s1, 16  ;;  %s5446_s8 = scalar_lea.vmem %s140_s1, 32 }
  0xb4   :  { %p5443_p13 = scmp.ne.s32.totalorder %s140_s1, %s5442_s21  ;;  %p5447_p0 = scmp.lt.s32.totalorder %s140_s1, %s140_s1 }
  0xb5   :  { %p5448_p1 = scmp.lt.s32.totalorder %s5446_s8, %s5442_s21 }
  0xb7   :  { %p5449_p2 = por %p5448_p1, %p5447_p0 }
  0xb9   :  { %p5450_p3 = pnand %p5449_p2, %p5443_p13 }
  0xbb   :  { %5453 = shalt.err (!%p5450_p3)
}
  0xbc   :  { %142 = dma.hbm_to_vmem [thread:$0]  %s5913_s10, 16, %s140_s1, [#allocation19]  }
  0xbd   :  { %5476 = dma.done.wait [#allocation4], 448  }
  0xbe   :  { %5477 = vsyncadd [#allocation4], 4294966848 }
  0xbf   :  { %5478 = dma.done.wait [#allocation7], 43056  }
  0xc0   :  { %5479 = vsyncadd [#allocation7], 4294924240 }
  0xc1   :  { %5480 = dma.done.wait [#allocation10], 3088  }
  0xc2   :  { %5481 = vsyncadd [#allocation10], 4294964208 }
  0xc3   :  { %5482 = dma.done.wait [#allocation13], 1040  }
  0xc4   :  { %5483 = vsyncadd [#allocation13], 4294966256 }
  0xc5   :  { %5484 = dma.done.wait [#allocation16], 1040  }
  0xc6   :  { %5485 = vsyncadd [#allocation16], 4294966256 }
  0xc7   :  { %5486 = dma.done.wait [#allocation19], 1040  }
  0xc8   :  { %5487 = vsyncadd [#allocation19], 4294966256  ;;  %v4711_v0 = vld [vmem:[#allocation6 + $0x4] ss:$12 sps:$4 sm:$0xff]   ;;  %v4713_v1 = vld [vmem:[#allocation6] ss:$12 sps:$4 sm:$0xff]   ;;  %v191_v9 = vlaneseq }
  0xc9   :  { %2763 = vmatprep.subr.bf16.mxu0 %v4711_v0  ;;  %v4714_v2 = vld [vmem:[#allocation6 + $0x1c] ss:$12 sps:$4 sm:$0xff]   ;;  %v4716_v3 = vld [vmem:[#allocation6 + $0x18] ss:$12 sps:$4 sm:$0xff]   ;;  %v4717_v4 = vld [vmem:[#allocation6 + $0x34] ss:$12 sps:$4 sm:$0xff]  }
  0xca   :  { %2764 = vmatpush1.bf16.msra.mxu0 %v4713_v1  ;;  %v4719_v5 = vld [vmem:[#allocation6 + $0x30] ss:$12 sps:$4 sm:$0xff]   ;;  %v4720_v6 = vld [vmem:[#allocation6 + $0x4c] ss:$12 sps:$4 sm:$0xff]   ;;  %v5505_v7 = vmov 1983009808  }
  0xcb   :  { %2765 = vmatprep.subr.bf16.mxu0 %v4714_v2  ;;  %v189_v8 = vunpack.c.l.s4 %v5505_v7  ;;  %v4722_v10 = vld [vmem:[#allocation6 + $0x48] ss:$12 sps:$4 sm:$0xff]   ;;  %v4723_v11 = vld [vmem:[#allocation6 + $0x64] ss:$12 sps:$4 sm:$0xff]   ;;  %v5722_v13 = vshrl.u32 %v191_v9, 7  ;;  %vm177_vm0 = vcmask 1040944  }
  0xcc   :  { %v4725_v14 = vld [vmem:[#allocation6 + $0x60] ss:$12 sps:$4 sm:$0xff]   ;;  %v5506_v15 = vmov 1966171168   ;;  %v4726_v17 = vld [vmem:[#allocation6 + $0x7c] ss:$12 sps:$4 sm:$0xff]  }
  0xcd   :  { %v190_v12 = vunpack.c.0.s8 %v189_v8  ;;  %v293_v16 = vunpack.c.l.s4 %v5506_v15  ;;  %v4728_v19 = vld [vmem:[#allocation6 + $0x78] ss:$12 sps:$4 sm:$0xff]   ;;  %v4729_v21 = vld [vmem:[#allocation6 + $0x94] ss:$12 sps:$4 sm:$0xff]   ;;  %v180_v23 = vld [vmem:[#allocation3 + $0x8] sm:$0xff]  ;;  %vm380_vm1 = vcmask 1040384  }
  0xce   :  { %2766 = vmatpush1.bf16.msra.mxu0 %v4716_v3  ;;  %v179_v22 = vld [vmem:[#allocation3] sm:$0xff]  ;;  %v204_v26 = vcombine.high %v180_v23, %v180_v23  ;;  %v4731_v28 = vld [vmem:[#allocation6 + $0x90] ss:$12 sps:$4 sm:$0xff]   ;;  %v4732_v30 = vld [vmem:[#allocation6 + $0xac] ss:$12 sps:$4 sm:$0xff]   ;;  %vm381_vm2 = vcmask 1041409  }
  0xcf   :  { %2767 = vmatprep.subr.bf16.mxu0 %v4717_v4  ;;  %v5725_v18 = vsub.s32 %v190_v12, %v5722_v13  ;;  %v294_v20 = vunpack.c.0.s8 %v293_v16  ;;  %v187_v24 = vcombine.high %v179_v22, %v179_v22  ;;  %v4734_v35 = vld [vmem:[#allocation6 + $0xa8] ss:$12 sps:$4 sm:$0xff]   ;;  %v4735_v42 = vld [vmem:[#allocation6 + $0xc4] ss:$12 sps:$4 sm:$0xff]   ;;  %v4737_v47 = vld [vmem:[#allocation6 + $0xc0] ss:$12 sps:$4 sm:$0xff]  }
  0xd0   :  { %v4770_v40 = vld [vmem:[#allocation6 + $0xc8] ss:$12 sps:$4 sm:$0xff]   ;;  %v4775_v50 = vld [vmem:[#allocation6 + $0xe0] ss:$12 sps:$4 sm:$0xff]   ;;  %v4780_v55 = vld [vmem:[#allocation6 + $0xf8] ss:$12 sps:$4 sm:$0xff]  }
  0xd1   :  { %v194_v25 = vrot.slane %v179_v22, %v5725_v18  ;;  %v211_v27 = vrot.slane %v180_v23, %v5725_v18  ;;  %v5730_v29 = vsub.s32 %v294_v20, %v5722_v13  ;;  %v201_v31 = vrot.slane %v187_v24, %v5725_v18  ;;  %v4771_v41 = vld [vmem:[#allocation6 + $0x8] ss:$12 sps:$4 sm:$0xff]   ;;  %4372 = vmatprep.subr.bf16.mxu1 %v4770_v40  ;;  %v4776_v51 = vld [vmem:[#allocation6 + $0x20] ss:$12 sps:$4 sm:$0xff]   ;;  %v4781_v58 = vld [vmem:[#allocation6 + $0x38] ss:$12 sps:$4 sm:$0xff]  }
  0xd2   :  { %2768 = vmatpush1.bf16.msra.mxu0 %v4719_v5  ;;  %v218_v33 = vrot.slane %v204_v26, %v5725_v18  ;;  %4373 = vmatpush3.bf16.msra.mxu1 %v4771_v41  ;;  %v4738_v52 = vld [vmem:[#allocation6 + $0xdc] ss:$12 sps:$4 sm:$0xff]   ;;  %v4740_v59 = vld [vmem:[#allocation6 + $0xd8] ss:$12 sps:$4 sm:$0xff]   ;;  %v4741_v60 = vld [vmem:[#allocation6 + $0xf4] ss:$12 sps:$4 sm:$0xff]  }
  0xd3   :  { %2769 = vmatprep.subr.bf16.mxu0 %v4720_v6  ;;  %v202_v32 = vcombine.high %v194_v25, %v194_v25  ;;  %v219_v34 = vcombine.high %v211_v27, %v211_v27  ;;  %v203_v36 = vcombine.high %v201_v31, %v201_v31  ;;  %4374 = vmatprep.subr.bf16.mxu1 %v4775_v50  ;;  %v4785_v62 = vld [vmem:[#allocation6 + $0x110] ss:$12 sps:$4 sm:$0xff]   ;;  %v4744_v2 = vld [vmem:[#allocation6 + $0x10c] ss:$12 sps:$4 sm:$0xff]   ;;  %v4790_v4 = vld [vmem:[#allocation6 + $0x128] ss:$12 sps:$4 sm:$0xff]  }
  0xd4   :  { %v220_v37 = vcombine.high %v218_v33, %v218_v33  ;;  %v4743_v63 = vld [vmem:[#allocation6 + $0xf0] ss:$12 sps:$4 sm:$0xff]   ;;  %v4746_v5 = vld [vmem:[#allocation6 + $0x108] ss:$12 sps:$4 sm:$0xff]   ;;  %v4795_v8 = vld [vmem:[#allocation6 + $0x140] ss:$12 sps:$4 sm:$0xff]  }
  0xd5   :  { %v3977_v38 = vpack.c.bf16 %v202_v32, %v194_v25  ;;  %v3979_v39 = vpack.c.bf16 %v219_v34, %v211_v27  ;;  %v3978_v43 = vpack.c.bf16 %v203_v36, %v201_v31  ;;  %v4786_v1 = vld [vmem:[#allocation6 + $0x50] ss:$12 sps:$4 sm:$0xff]   ;;  %v4791_v7 = vld [vmem:[#allocation6 + $0x68] ss:$12 sps:$4 sm:$0xff]   ;;  %v4800_v12 = vld [vmem:[#allocation6 + $0x158] ss:$12 sps:$4 sm:$0xff]  }
  0xd6   :  { %2770 = vmatpush1.bf16.msra.mxu0 %v4722_v10  ;;  %v3980_v44 = vpack.c.bf16 %v220_v37, %v218_v33  ;;  %4375 = vmatpush3.bf16.msra.mxu1 %v4776_v51  ;;  %v4747_v9 = vld [vmem:[#allocation6 + $0x124] ss:$12 sps:$4 sm:$0xff]   ;;  %v4749_v10 = vld [vmem:[#allocation6 + $0x120] ss:$12 sps:$4 sm:$0xff]   ;;  %v4810_v22 = vld [vmem:[#allocation6 + $0x248] ss:$12 sps:$4 sm:$0xff]  }
  0xd7   :  { %2771 = vmatprep.subr.bf16.mxu0 %v4723_v11  ;;  %v298_v45 = vrot.slane %v3977_v38, %v5730_v29  ;;  %v312_v46 = vrot.slane %v3979_v39, %v5730_v29  ;;  %v305_v48 = vrot.slane %v3978_v43, %v5730_v29  ;;  %4376 = vmatprep.subr.bf16.mxu1 %v4780_v55  ;;  %v4796_v11 = vld [vmem:[#allocation6 + $0x80] ss:$12 sps:$4 sm:$0xff]   ;;  %v4752_v15 = vld [vmem:[#allocation6 + $0x138] ss:$12 sps:$4 sm:$0xff]   ;;  %v4806_v20 = vld [vmem:[#allocation6 + $0xb0] ss:$12 sps:$4 sm:$0xff]  }
  0xd8   :  { %v319_v49 = vrot.slane %v3980_v44, %v5730_v29  ;;  %v4801_v16 = vld [vmem:[#allocation6 + $0x98] ss:$12 sps:$4 sm:$0xff]   ;;  %v4758_v24 = vld [vmem:[#allocation6 + $0x168] ss:$12 sps:$4 sm:$0xff]   ;;  %v4815_v27 = vld [vmem:[#allocation6 + $0x260] ss:$12 sps:$4 sm:$0xff]  }
  0xd9   :  { %v320_v53 = vcombine.low %v298_v45, %v305_v48  ;;  %v4756_v23 = vld [vmem:[#allocation6 + $0x16c] ss:$12 sps:$4 sm:$0xff]   ;;  %v4811_v25 = vld [vmem:[#allocation6 + $0x188] ss:$12 sps:$4 sm:$0xff]   ;;  %v4825_v37 = vld [vmem:[#allocation6 + $0x290] ss:$12 sps:$4 sm:$0xff]  }
  0xda   :  { %2772 = vmatpush1.bf16.msra.mxu0 %v4725_v14  ;;  %v321_v54 = vcombine.low %v312_v46, %v319_v49  ;;  %4377 = vmatpush3.bf16.msra.mxu1 %v4781_v58  ;;  %v4750_v14 = vld [vmem:[#allocation6 + $0x13c] ss:$12 sps:$4 sm:$0xff]   ;;  %v4761_v31 = vld [vmem:[#allocation6 + $0x180] ss:$12 sps:$4 sm:$0xff]   ;;  %v4820_v33 = vld [vmem:[#allocation6 + $0x278] ss:$12 sps:$4 sm:$0xff]  }
  0xdb   :  { %2773 = vmatprep.subr.bf16.mxu0 %v4726_v17  ;;  %v328_v56 = vrot.slane %v320_v53, %v5730_v29  ;;  %4378 = vmatprep.subr.bf16.mxu1 %v4785_v62  ;;  %v4805_v17 = vld [vmem:[#allocation6 + $0x170] ss:$12 sps:$4 sm:$0xff]   ;;  %v4816_v32 = vld [vmem:[#allocation6 + $0x1a0] ss:$12 sps:$4 sm:$0xff]   ;;  %v4821_v36 = vld [vmem:[#allocation6 + $0x1b8] ss:$12 sps:$4 sm:$0xff]  }
  0xdc   :  { %v5740_v57 = vrot.slane %v321_v54, %v5730_v29  ;;  %v4766_v34 = vld [vmem:[#allocation6 + $0x19c] ss:$12 sps:$4 sm:$0xff]   ;;  %v4769_v38 = vld [vmem:[#allocation6 + $0x1b4] ss:$12 sps:$4 sm:$0xff]   ;;  %v4779_v46 = vld [vmem:[#allocation6 + $0x1e4] ss:$12 sps:$4 sm:$0xff]  }
  0xdd   :  { %v4767_v39 = vld [vmem:[#allocation6 + $0x1b0] ss:$12 sps:$4 sm:$0xff]   ;;  %v4830_v41 = vld [vmem:[#allocation6 + $0x2a8] ss:$12 sps:$4 sm:$0xff]   ;;  %v4835_v45 = vld [vmem:[#allocation6 + $0x2c0] ss:$12 sps:$4 sm:$0xff]  }
  0xde   :  { %2774 = vmatpush1.bf16.msra.mxu0 %v4728_v19  ;;  %v336_v61 = vcombine.low %v328_v56, %v5740_v57  ;;  %4379 = vmatpush3.bf16.msra.mxu1 %v4786_v1  ;;  %v4753_v19 = vld [vmem:[#allocation6 + $0x154] ss:$12 sps:$4 sm:$0xff]   ;;  %v4826_v40 = vld [vmem:[#allocation6 + $0x1d0] ss:$12 sps:$4 sm:$0xff]   ;;  %v5211_v49 = vcombine.low %v5740_v57, %v5740_v57  ;;  %v4840_v50 = vld [vmem:[#allocation6 + $0x2d8] ss:$12 sps:$4 sm:$0xff]  }
  0xdf   :  { %2775 = vmatprep.subr.bf16.mxu0 %v4729_v21  ;;  %4380 = vmatprep.subr.bf16.mxu1 %v4790_v4  ;;  %v4755_v21 = vld [vmem:[#allocation6 + $0x150] ss:$12 sps:$4 sm:$0xff]   ;;  %v4831_v43 = vld [vmem:[#allocation6 + $0x1e8] ss:$12 sps:$4 sm:$0xff]   ;;  %v4836_v48 = vld [vmem:[#allocation6 + $0x200] ss:$12 sps:$4 sm:$0xff]  }
  0xe0   :  { %v868_v0 = vrot.slane %v336_v61, %v5730_v29  ;;  %v4772_v44 = vld [vmem:[#allocation6 + $0x1c8] ss:$12 sps:$4 sm:$0xff]   ;;  %v4841_v53 = vld [vmem:[#allocation6 + $0x218] ss:$12 sps:$4 sm:$0xff]   ;;  %v5753_v54 = vrot.slane %v5211_v49, %v5730_v29  ;;  %v4845_v55 = vld [vmem:[#allocation6 + $0x2f0] ss:$12 sps:$4 sm:$0xff]  }
  0xe1   :  { %v4784_v51 = vld [vmem:[#allocation6 + $0x1fc] ss:$12 sps:$4 sm:$0xff]   ;;  %v4789_v56 = vld [vmem:[#allocation6 + $0x214] ss:$12 sps:$4 sm:$0xff]   ;;  %v4794_v61 = vld [vmem:[#allocation6 + $0x22c] ss:$12 sps:$4 sm:$0xff]  }
  0xe2   :  { %2776 = vmatpush1.bf16.msra.mxu0 %v4731_v28  ;;  %v876_v3 = vcombine.high %v868_v0, %v868_v0  ;;  %4381 = vmatpush3.bf16.msra.mxu1 %v4791_v7  ;;  %v5746_v26 = vrot.slane %v868_v0, %v5730_v29  ;;  %v4763_v28 = vld [vmem:[#allocation6 + $0x184] ss:$12 sps:$4 sm:$0xff]   ;;  %v877_v57 = vcombine.high %v5753_v54, %v5753_v54  ;;  %v4792_v62 = vld [vmem:[#allocation6 + $0x228] ss:$12 sps:$4 sm:$0xff]   ;;  %v4856_v4 = vld [vmem:[#allocation6 + $0x320] ss:$12 sps:$4 sm:$0xff]  }
  0xe3   :  { %2777 = vmatprep.subr.bf16.mxu0 %v4732_v30  ;;  %4382 = vmatprep.subr.bf16.mxu1 %v4795_v8  ;;  %v4787_v58 = vld [vmem:[#allocation6 + $0x210] ss:$12 sps:$4 sm:$0xff]   ;;  %v5507_v8 = vmov 0   ;;  %v4849_v49 = vld [vmem:[#allocation6 + $0x334] ss:$12 sps:$4 sm:$0xff]   ;;  %vm5784_vm3 = vmor %vm381_vm2, %vm380_vm1  ;;  %vm383_vm4 = vcmask 1042434  }
  0xe4   :  { %v898_v6 = vrot.slane %v876_v3, %v5730_v29  ;;  %v5758_v0 = vrot.slane %v877_v57, %v5730_v29  ;;  %v5762_v1 = vcombine.high %v5746_v26, %v5746_v26  ;;  %v4799_v3 = vld [vmem:[#allocation6 + $0x244] ss:$12 sps:$4 sm:$0xff]   ;;  %v4804_v7 = vld [vmem:[#allocation6 + $0x25c] ss:$12 sps:$4 sm:$0xff]   ;;  %178 = vst.msk [vmem:[#allocation2 + $0xd] sm:$0x1] %vm177_vm0, %v5507_v8  ;;  %vm384_vm5 = vmor %vm383_vm4, %vm5784_vm3 }
  0xe5   :  { %v4916_v57 = vld [vmem:[#allocation6 + $0x500] ss:$12 sps:$4 sm:$0xff]   ;;  %v4872_v8 = vld [vmem:[#allocation6 + $0x3a8] ss:$12 sps:$4 sm:$0xff]   ;;  %vm385_vm6 = vcmask 1043459   ;;  %vm387_vm8 = vcmask 1044484  }
  0xe6   :  { %2778 = vmatpush1.bf16.msra.mxu0 %v4734_v35  ;;  %2795 = vmatprep.mubr.bf16.mxu0 %v898_v6  ;;  %v908_v30 = vcombine.high %v898_v6, %v898_v6  ;;  %v4764_v35 = vld [vmem:[#allocation6 + $0x198] ss:$12 sps:$4 sm:$0xff]   ;;  %vm386_vm7 = vmor %vm385_vm6, %vm384_vm5  ;;  %vm389_vm10 = vcmask 570373   ;;  %vm5509_vm12 = vmmov 0   ;;  %s5510_s10 = smov [#allocation21]   ;;  %vm3954_vm13 = vcmask 41984  }
  0xe7   :  { %2779 = vmatprep.subr.bf16.mxu0 %v4735_v42  ;;  %3082 = vmatprep.mubr.bf16.mxu1 %v898_v6  ;;  %v4774_v42 = vld [vmem:[#allocation6 + $0x1cc] ss:$12 sps:$4 sm:$0xff]   ;;  %vm388_vm9 = vmor %vm387_vm8, %vm386_vm7  ;;  %s3962_s0 = sshll.u32 %s5510_s10, 4  ;;  %s3963_s0 = int_to_ptr.vmem [resolvable:$true] %s3962_s0 }
  0xe8   :  { %4383 = vmatpush3.bf16.msra.mxu1 %v4796_v11  ;;  %v4860_v6 = vld [vmem:[#allocation6 + $0x3f8] ss:$12 sps:$4 sm:$0xff]   ;;  %v4865_v11 = vld [vmem:[#allocation6 + $0x410] ss:$12 sps:$4 sm:$0xff]   ;;  %vm390_vm11 = vmor %vm389_vm10, %vm388_vm9  ;;  %s5454_s4 = scalar_lea.vmem %s3963_s0, 32  ;;  %p5459_p5 = scmp.lt.s32.totalorder %s3963_s0, %s3963_s0 }
  0xe9   :  { %4384 = vmatprep.subr.bf16.mxu1 %v4800_v12  ;;  %v4809_v12 = vld [vmem:[#allocation6 + $0x274] ss:$12 sps:$4 sm:$0xff]   ;;  %p5455_p4 = scmp.ne.s32.totalorder %s3963_s0, %s5454_s4  ;;  %p5460_p6 = scmp.lt.s32.totalorder %s5454_s4, %s5454_s4 }
  0xea   :  { %2780 = vmatpush1.bf16.msra.mxu0 %v4737_v47  ;;  %v4777_v47 = vld [vmem:[#allocation6 + $0x1e0] ss:$12 sps:$4 sm:$0xff]  }
  0xeb   :  { %2781 = vmatprep.subr.bf16.mxu0 %v4738_v52  ;;  %v4782_v52 = vld [vmem:[#allocation6 + $0x1f8] ss:$12 sps:$4 sm:$0xff]   ;;  %p5461_p7 = por %p5460_p6, %p5459_p5 }
  0xec   :  { %4385 = vmatpush3.bf16.msra.mxu1 %v4801_v16  ;;  %v4870_v16 = vld [vmem:[#allocation6 + $0x428] ss:$12 sps:$4 sm:$0xff]  }
  0xed   :  { %4386 = vmatprep.subr.bf16.mxu1 %v4805_v17  ;;  %v4814_v17 = vld [vmem:[#allocation6 + $0x28c] ss:$12 sps:$4 sm:$0xff]   ;;  %p5462_p8 = pnand %p5461_p7, %p5455_p4 }
  0xee   :  { %2782 = vmatpush1.bf16.msra.mxu0 %v4740_v59  ;;  %v4846_v59 = vld [vmem:[#allocation6 + $0x230] ss:$12 sps:$4 sm:$0xff]  }
  0xef   :  { %2783 = vmatprep.subr.bf16.mxu0 %v4741_v60  ;;  %v4850_v60 = vld [vmem:[#allocation6 + $0x3c8] ss:$12 sps:$4 sm:$0xff]  }
  0xf0   :  { %4387 = vmatpush3.bf16.msra.mxu1 %v4806_v20  ;;  %v4871_v20 = vld [vmem:[#allocation6 + $0x368] ss:$12 sps:$4 sm:$0xff]  }
  0xf1   :  { %4394 = vmatprep.subr.bf16.mxu1 %v4810_v22  ;;  %v4819_v22 = vld [vmem:[#allocation6 + $0x2a4] ss:$12 sps:$4 sm:$0xff]  }
  0xf2   :  { %2784 = vmatpush1.bf16.msra.mxu0 %v4743_v63  ;;  %v4851_v63 = vld [vmem:[#allocation6 + $0x308] ss:$12 sps:$4 sm:$0xff]  }
  0xf3   :  { %2785 = vmatprep.subr.bf16.mxu0 %v4744_v2  ;;  %3083 = vmatmul.mubr.bf16.vlgmr.msra.gmra.mrb[0].mxu1 %v5746_v26  ;;  %v4855_v2 = vld [vmem:[#allocation6 + $0x3e0] ss:$12 sps:$4 sm:$0xff]  }
  0xf4   :  { %4395 = vmatpush3.bf16.msra.mxu1 %v4811_v25  ;;  %3122 = vmatprep.mubr.bf16.mxu1 %v908_v30  ;;  %v4880_v25 = vld [vmem:[#allocation6 + $0x458] ss:$12 sps:$4 sm:$0xff]  }
  0xf5   :  { %4396 = vmatprep.subr.bf16.mxu1 %v4815_v27  ;;  %v4881_v27 = vld [vmem:[#allocation6 + $0x398] ss:$12 sps:$4 sm:$0xff]  }
  0xf6   :  { %2786 = vmatpush1.bf16.msra.mxu0 %v4746_v5  ;;  %v4797_v5 = vld [vmem:[#allocation6 + $0x240] ss:$12 sps:$4 sm:$0xff]  }
  0xf7   :  { %2787 = vmatprep.subr.bf16.mxu0 %v4747_v9  ;;  %v4802_v9 = vld [vmem:[#allocation6 + $0x258] ss:$12 sps:$4 sm:$0xff]  }
  0xf8   :  { %4397 = vmatpush3.bf16.msra.mxu1 %v4816_v32  ;;  %v4827_v32 = vld [vmem:[#allocation6 + $0x2d0] ss:$12 sps:$4 sm:$0xff]  }
  0xf9   :  { %4398 = vmatprep.subr.bf16.mxu1 %v4820_v33  ;;  %v4886_v33 = vld [vmem:[#allocation6 + $0x3b0] ss:$12 sps:$4 sm:$0xff]  }
  0xfa   :  { %2788 = vmatpush1.bf16.msra.mxu0 %v4749_v10  ;;  %v4861_v10 = vld [vmem:[#allocation6 + $0x338] ss:$12 sps:$4 sm:$0xff]  }
  0xfb   :  { %2789 = vmatprep.subr.bf16.mxu0 %v4750_v14  ;;  %v4807_v14 = vld [vmem:[#allocation6 + $0x270] ss:$12 sps:$4 sm:$0xff]  }
  0xfc   :  { %4399 = vmatpush3.bf16.msra.mxu1 %v4821_v36  ;;  %v5768_v36 = vrot.slane %v5753_v54, %v5730_v29  ;;  %v4852_v54 = vld [vmem:[#allocation6 + $0x348] ss:$12 sps:$4 sm:$0xff]  }
  0xfd   :  { %4400 = vmatprep.subr.bf16.mxu1 %v4825_v37  ;;  %v4832_v37 = vld [vmem:[#allocation6 + $0x2e8] ss:$12 sps:$4 sm:$0xff]  }
  0xfe   :  { %2790 = vmatpush1.bf16.msra.mxu0 %v4752_v15  ;;  %v4866_v15 = vld [vmem:[#allocation6 + $0x350] ss:$12 sps:$4 sm:$0xff]  }
  0xff   :  { %2791 = vmatprep.subr.bf16.mxu0 %v4753_v19  ;;  %v4812_v19 = vld [vmem:[#allocation6 + $0x288] ss:$12 sps:$4 sm:$0xff]  }
 0x100   :  { %4401 = vmatpush3.bf16.msra.mxu1 %v4826_v40  ;;  %v4895_v40 = vld [vmem:[#allocation6 + $0x560] ss:$12 sps:$4 sm:$0xff]  }
 0x101   :  { %4402 = vmatprep.subr.bf16.mxu1 %v4830_v41  ;;  %v4839_v41 = vld [vmem:[#allocation6 + $0x304] ss:$12 sps:$4 sm:$0xff]  }
 0x102   :  { %2792 = vmatpush1.bf16.msra.mxu0 %v4755_v21  ;;  %v4875_v21 = vld [vmem:[#allocation6 + $0x440] ss:$12 sps:$4 sm:$0xff]  }
 0x103   :  { %2793 = vmatprep.subr.bf16.mxu0 %v4756_v23  ;;  %v4817_v23 = vld [vmem:[#allocation6 + $0x2a0] ss:$12 sps:$4 sm:$0xff]  }
 0x104   :  { %4403 = vmatpush3.bf16.msra.mxu1 %v4831_v43  ;;  %v4896_v43 = vld [vmem:[#allocation6 + $0x4a0] ss:$12 sps:$4 sm:$0xff]  }
 0x105   :  { %4404 = vmatprep.subr.bf16.mxu1 %v4835_v45  ;;  %v4844_v45 = vld [vmem:[#allocation6 + $0x31c] ss:$12 sps:$4 sm:$0xff]  }
 0x106   :  { %2794 = vmatpush1.bf16.msra.mxu0 %v4758_v24  ;;  %v4876_v24 = vld [vmem:[#allocation6 + $0x380] ss:$12 sps:$4 sm:$0xff]  }
 0x107   :  { %2804 = vmatprep.subr.bf16.mxu0 %v4763_v28  ;;  %v4822_v28 = vld [vmem:[#allocation6 + $0x2b8] ss:$12 sps:$4 sm:$0xff]  }
 0x108   :  { %4405 = vmatpush3.bf16.msra.mxu1 %v4836_v48  ;;  %v4905_v48 = vld [vmem:[#allocation6 + $0x590] ss:$12 sps:$4 sm:$0xff]  }
 0x109   :  { %2796 = vmatmul.mubr.bf16.vlgmr.msra.gmra.mrb[0].mxu0 %v5746_v26  ;;  %4406 = vmatprep.subr.bf16.mxu1 %v4840_v50  ;;  %v4824_v26 = vld [vmem:[#allocation6 + $0x2bc] ss:$12 sps:$4 sm:$0xff]  }
 0x10a   :  { %2805 = vmatpush1.bf16.msra.mxu0 %v4761_v31  ;;  %2836 = vmatprep.mubr.bf16.mxu0 %v908_v30  ;;  %v4885_v30 = vld [vmem:[#allocation6 + $0x470] ss:$12 sps:$4 sm:$0xff]   ;;  %v4829_v31 = vld [vmem:[#allocation6 + $0x2d4] ss:$12 sps:$4 sm:$0xff]  }
 0x10b   :  { %2806 = vmatprep.subr.bf16.mxu0 %v4766_v34  ;;  %v4890_v34 = vld [vmem:[#allocation6 + $0x548] ss:$12 sps:$4 sm:$0xff]   ;;  %v4906_v50 = vld [vmem:[#allocation6 + $0x4d0] ss:$12 sps:$4 sm:$0xff]  }
 0x10c   :  { %4407 = vmatpush3.bf16.msra.mxu1 %v4841_v53  ;;  %v4854_v53 = vld [vmem:[#allocation6 + $0x34c] ss:$12 sps:$4 sm:$0xff]  }
 0x10d   :  { %4408 = vmatprep.subr.bf16.mxu1 %v4845_v55  ;;  %v4911_v55 = vld [vmem:[#allocation6 + $0x4e8] ss:$12 sps:$4 sm:$0xff]  }
 0x10e   :  { %2807 = vmatpush1.bf16.msra.mxu0 %v4764_v35  ;;  %v4834_v35 = vld [vmem:[#allocation6 + $0x2ec] ss:$12 sps:$4 sm:$0xff]  }
 0x10f   :  { %2808 = vmatprep.subr.bf16.mxu0 %v4769_v38  ;;  %v4891_v38 = vld [vmem:[#allocation6 + $0x488] ss:$12 sps:$4 sm:$0xff]  }
 0x110   :  { %4409 = vmatpush3.bf16.msra.mxu1 %v4846_v59  ;;  %v4857_v59 = vld [vmem:[#allocation6 + $0x360] ss:$12 sps:$4 sm:$0xff]  }
 0x111   :  { %4416 = vmatprep.subr.bf16.mxu1 %v4850_v60  ;;  %v4920_v60 = vld [vmem:[#allocation6 + $0x5d8] ss:$12 sps:$4 sm:$0xff]  }
 0x112   :  { %2809 = vmatpush1.bf16.msra.mxu0 %v4767_v39  ;;  %v5772_v39 = vcombine.high %v5758_v0, %v5758_v0 }
 0x113   :  { %2810 = vmatprep.subr.bf16.mxu0 %v4774_v42  ;;  %3123 = vmatmul.mubr.bf16.vlgmr.msra.gmra.mrb[4].mxu1 %v5762_v1  ;;  %v4837_v42 = vld [vmem:[#allocation6 + $0x300] ss:$12 sps:$4 sm:$0xff]  }
 0x114   :  { %4417 = vmatpush3.bf16.msra.mxu1 %v4851_v63  ;;  %3162 = vmatprep.mubr.bf16.mxu1 %v5758_v0  ;;  %v4921_v63 = vld [vmem:[#allocation6 + $0x518] ss:$12 sps:$4 sm:$0xff]  }
 0x115   :  { %4418 = vmatprep.subr.bf16.mxu1 %v4855_v2  ;;  %v4867_v2 = vld [vmem:[#allocation6 + $0x390] ss:$12 sps:$4 sm:$0xff]  }
 0x116   :  { %2811 = vmatpush1.bf16.msra.mxu0 %v4772_v44  ;;  %v4900_v44 = vld [vmem:[#allocation6 + $0x578] ss:$12 sps:$4 sm:$0xff]  }
 0x117   :  { %2812 = vmatprep.subr.bf16.mxu0 %v4779_v46  ;;  %v4842_v46 = vld [vmem:[#allocation6 + $0x318] ss:$12 sps:$4 sm:$0xff]  }
 0x118   :  { %4419 = vmatpush3.bf16.msra.mxu1 %v4856_v4  ;;  %v4930_v4 = vld [vmem:[#allocation6 + $0x6c8] ss:$12 sps:$4 sm:$0xff]  }
 0x119   :  { %4420 = vmatprep.subr.bf16.mxu1 %v4860_v6  ;;  %v5780_v6 = vcombine.high %v5768_v36, %v5768_v36 }
 0x11a   :  { %2813 = vmatpush1.bf16.msra.mxu0 %v4777_v47  ;;  %v4901_v47 = vld [vmem:[#allocation6 + $0x4b8] ss:$12 sps:$4 sm:$0xff]  }
 0x11b   :  { %2814 = vmatprep.subr.bf16.mxu0 %v4784_v51  ;;  %v4847_v51 = vld [vmem:[#allocation6 + $0x330] ss:$12 sps:$4 sm:$0xff]  }
 0x11c   :  { %4421 = vmatpush3.bf16.msra.mxu1 %v4861_v10  ;;  %v4879_v10 = vld [vmem:[#allocation6 + $0x3c4] ss:$12 sps:$4 sm:$0xff]  }
 0x11d   :  { %4422 = vmatprep.subr.bf16.mxu1 %v4865_v11  ;;  %v4877_v11 = vld [vmem:[#allocation6 + $0x3c0] ss:$12 sps:$4 sm:$0xff]  }
 0x11e   :  { %2815 = vmatpush1.bf16.msra.mxu0 %v4782_v52  ;;  %v4910_v52 = vld [vmem:[#allocation6 + $0x5a8] ss:$12 sps:$4 sm:$0xff]  }
 0x11f   :  { %2816 = vmatprep.subr.bf16.mxu0 %v4789_v56  ;;  %v4915_v56 = vld [vmem:[#allocation6 + $0x5c0] ss:$12 sps:$4 sm:$0xff]  }
 0x120   :  { %4423 = vmatpush3.bf16.msra.mxu1 %v4866_v15  ;;  %v4940_v15 = vld [vmem:[#allocation6 + $0x6f8] ss:$12 sps:$4 sm:$0xff]  }
 0x121   :  { %4424 = vmatprep.subr.bf16.mxu1 %v4870_v16  ;;  %v181_v16 = vld [vmem:[#allocation3 + $0x10] sm:$0xff] }
 0x122   :  { %2817 = vmatpush1.bf16.msra.mxu0 %v4787_v58  ;;  %v4859_v58 = vld [vmem:[#allocation6 + $0x364] ss:$12 sps:$4 sm:$0xff]  }
 0x123   :  { %2818 = vmatprep.subr.bf16.mxu0 %v4794_v61  ;;  %v4864_v61 = vld [vmem:[#allocation6 + $0x37c] ss:$12 sps:$4 sm:$0xff]  }
 0x124   :  { %4425 = vmatpush3.bf16.msra.mxu1 %v4871_v20  ;;  %v228_v20 = vrot.slane %v181_v16, %v5725_v18 }
 0x125   :  { %4426 = vmatprep.subr.bf16.mxu1 %v4875_v21 }
 0x126   :  { %2819 = vmatpush1.bf16.msra.mxu0 %v4792_v62  ;;  %v4862_v62 = vld [vmem:[#allocation6 + $0x378] ss:$12 sps:$4 sm:$0xff]  }
 0x127   :  { %2820 = vmatprep.subr.bf16.mxu0 %v4799_v3  ;;  %v4926_v3 = vld [vmem:[#allocation6 + $0x530] ss:$12 sps:$4 sm:$0xff]  }
 0x128   :  { %4427 = vmatpush3.bf16.msra.mxu1 %v4876_v24 }
 0x129   :  { %4428 = vmatprep.subr.bf16.mxu1 %v4880_v25  ;;  %v236_v25 = vcombine.high %v228_v20, %v228_v20 }
 0x12a   :  { %2821 = vmatpush1.bf16.msra.mxu0 %v4797_v5  ;;  %v4874_v5 = vld [vmem:[#allocation6 + $0x3ac] ss:$12 sps:$4 sm:$0xff]  }
 0x12b   :  { %2822 = vmatprep.subr.bf16.mxu0 %v4804_v7  ;;  %v4931_v7 = vld [vmem:[#allocation6 + $0x608] ss:$12 sps:$4 sm:$0xff]  }
 0x12c   :  { %4429 = vmatpush3.bf16.msra.mxu1 %v4881_v27  ;;  %v4945_v27 = vld [vmem:[#allocation6 + $0x710] ss:$12 sps:$4 sm:$0xff]  }
 0x12d   :  { %4430 = vmatprep.subr.bf16.mxu1 %v4885_v30  ;;  %v4889_v30 = vld [vmem:[#allocation6 + $0x3f4] ss:$12 sps:$4 sm:$0xff]  }
 0x12e   :  { %2823 = vmatpush1.bf16.msra.mxu0 %v4802_v9  ;;  %v4935_v9 = vld [vmem:[#allocation6 + $0x6e0] ss:$12 sps:$4 sm:$0xff]  }
 0x12f   :  { %2824 = vmatprep.subr.bf16.mxu0 %v4809_v12  ;;  %v4936_v12 = vld [vmem:[#allocation6 + $0x620] ss:$12 sps:$4 sm:$0xff]  }
 0x130   :  { %4431 = vmatpush3.bf16.msra.mxu1 %v4886_v33  ;;  %v4887_v33 = vld [vmem:[#allocation6 + $0x3f0] ss:$12 sps:$4 sm:$0xff]  }
 0x131   :  { %4438 = vmatprep.subr.bf16.mxu1 %v4890_v34  ;;  %v4946_v34 = vld [vmem:[#allocation6 + $0x650] ss:$12 sps:$4 sm:$0xff]  }
 0x132   :  { %2825 = vmatpush1.bf16.msra.mxu0 %v4807_v14  ;;  %v4884_v14 = vld [vmem:[#allocation6 + $0x3dc] ss:$12 sps:$4 sm:$0xff]  }
 0x133   :  { %2826 = vmatprep.subr.bf16.mxu0 %v4814_v17  ;;  %3163 = vmatmul.mubr.bf16.vlgmr.msra.gmra.mrb[8].mxu1 %v5768_v36  ;;  %v3976_v17 = vld.sshfl [vmem:[#allocation3 + $0x18] sm:$0x33 pattern:$0x76325410] }
 0x134   :  { %4439 = vmatpush3.bf16.msra.mxu1 %v4891_v38  ;;  %3202 = vmatprep.mubr.bf16.mxu1 %v5772_v39  ;;  %v245_v21 = vcombine.high %v3976_v17, %v3976_v17 }
 0x135   :  { %4440 = vmatprep.subr.bf16.mxu1 %v4895_v40  ;;  %v4894_v40 = vld [vmem:[#allocation6 + $0x40c] ss:$12 sps:$4 sm:$0xff]  }
 0x136   :  { %2827 = vmatpush1.bf16.msra.mxu0 %v4812_v19  ;;  %v221_v19 = vcombine.high %v181_v16, %v181_v16  ;;  %v4982_v16 = vld [vmem:[#allocation6 + $0x7b8] ss:$12 sps:$4 sm:$0xff]  }
 0x137   :  { %2828 = vmatprep.subr.bf16.mxu0 %v4819_v22  ;;  %v4991_v22 = vld [vmem:[#allocation6 + $0x8a8] ss:$12 sps:$4 sm:$0xff]  }
 0x138   :  { %4441 = vmatpush3.bf16.msra.mxu1 %v4896_v43  ;;  %v235_v24 = vrot.slane %v221_v19, %v5725_v18  ;;  %v4927_v19 = vld [vmem:[#allocation6 + $0x4b0] ss:$12 sps:$4 sm:$0xff]  }
 0x139   :  { %4442 = vmatprep.subr.bf16.mxu1 %v4900_v44 }
 0x13a   :  { %2829 = vmatpush1.bf16.msra.mxu0 %v4817_v23  ;;  %v4941_v23 = vld [vmem:[#allocation6 + $0x638] ss:$12 sps:$4 sm:$0xff]  }
 0x13b   :  { %2830 = vmatprep.subr.bf16.mxu0 %v4824_v26  ;;  %v4882_v26 = vld [vmem:[#allocation6 + $0x3d8] ss:$12 sps:$4 sm:$0xff]  }
 0x13c   :  { %4443 = vmatpush3.bf16.msra.mxu1 %v4901_v47  ;;  %v4899_v47 = vld [vmem:[#allocation6 + $0x424] ss:$12 sps:$4 sm:$0xff]  }
 0x13d   :  { %4444 = vmatprep.subr.bf16.mxu1 %v4905_v48 }
 0x13e   :  { %2831 = vmatpush1.bf16.msra.mxu0 %v4822_v28  ;;  %v3983_v28 = vpack.c.bf16 %v245_v21, %v3976_v17  ;;  %v4986_v17 = vld [vmem:[#allocation6 + $0x890] ss:$12 sps:$4 sm:$0xff]  }
 0x13f   :  { %2832 = vmatprep.subr.bf16.mxu0 %v4829_v31  ;;  %v237_v31 = vcombine.high %v235_v24, %v235_v24  ;;  %v4987_v21 = vld [vmem:[#allocation6 + $0x7d0] ss:$12 sps:$4 sm:$0xff]  }
 0x140   :  { %4445 = vmatpush3.bf16.msra.mxu1 %v4906_v50  ;;  %v360_v38 = vrot.slane %v3983_v28, %v5730_v29  ;;  %v4956_v50 = vld [vmem:[#allocation6 + $0x680] ss:$12 sps:$4 sm:$0xff]   ;;  %v5001_v28 = vld [vmem:[#allocation6 + $0x8d8] ss:$12 sps:$4 sm:$0xff]  }
 0x141   :  { %4446 = vmatprep.subr.bf16.mxu1 %v4910_v52  ;;  %v4960_v52 = vld [vmem:[#allocation6 + $0x758] ss:$12 sps:$4 sm:$0xff]  }
 0x142   :  { %2833 = vmatpush1.bf16.msra.mxu0 %v4827_v32  ;;  %v3981_v32 = vpack.c.bf16 %v236_v25, %v228_v20  ;;  %v375_v44 = vrot.slane %v360_v38, %v5730_v29  ;;  %v4934_v20 = vld [vmem:[#allocation6 + $0x4cc] ss:$12 sps:$4 sm:$0xff]   ;;  %v5007_v38 = vld [vmem:[#allocation6 + $0x830] ss:$12 sps:$4 sm:$0xff]  }
 0x143   :  { %2834 = vmatprep.subr.bf16.mxu0 %v4834_v35  ;;  %v4950_v35 = vld [vmem:[#allocation6 + $0x728] ss:$12 sps:$4 sm:$0xff]   ;;  %v4937_v25 = vld [vmem:[#allocation6 + $0x4e0] ss:$12 sps:$4 sm:$0xff]  }
 0x144   :  { %4447 = vmatpush3.bf16.msra.mxu1 %v4911_v55  ;;  %v346_v18 = vrot.slane %v3981_v32, %v5730_v29  ;;  %v4961_v55 = vld [vmem:[#allocation6 + $0x698] ss:$12 sps:$4 sm:$0xff]   ;;  %v4949_v32 = vld [vmem:[#allocation6 + $0x514] ss:$12 sps:$4 sm:$0xff]  }
 0x145   :  { %4448 = vmatprep.subr.bf16.mxu1 %v4915_v56  ;;  %v4965_v56 = vld [vmem:[#allocation6 + $0x770] ss:$12 sps:$4 sm:$0xff]  }
 0x146   :  { %2835 = vmatpush1.bf16.msra.mxu0 %v4832_v37  ;;  %v3982_v37 = vpack.c.bf16 %v237_v31, %v235_v24  ;;  %v4992_v24 = vld [vmem:[#allocation6 + $0x7e8] ss:$12 sps:$4 sm:$0xff]   ;;  %v4942_v31 = vld [vmem:[#allocation6 + $0x4f8] ss:$12 sps:$4 sm:$0xff]  }
 0x147   :  { %2845 = vmatprep.subr.bf16.mxu0 %v4839_v41 }
 0x148   :  { %4449 = vmatpush3.bf16.msra.mxu1 %v4916_v57  ;;  %v353_v41 = vrot.slane %v3982_v37, %v5730_v29  ;;  %v4966_v57 = vld [vmem:[#allocation6 + $0x6b0] ss:$12 sps:$4 sm:$0xff]  }
 0x149   :  { %2837 = vmatmul.mubr.bf16.vlgmr.msra.gmra.mrb[0].mxu0 %v5762_v1  ;;  %4450 = vmatprep.subr.bf16.mxu1 %v4920_v60  ;;  %v4869_v1 = vld [vmem:[#allocation6 + $0x394] ss:$12 sps:$4 sm:$0xff]   ;;  %v4947_v37 = vld [vmem:[#allocation6 + $0x510] ss:$12 sps:$4 sm:$0xff]  }
 0x14a   :  { %2846 = vmatpush1.bf16.msra.mxu0 %v4837_v42  ;;  %2877 = vmatprep.mubr.bf16.mxu0 %v5758_v0  ;;  %v4925_v0 = vld [vmem:[#allocation6 + $0x5f0] ss:$12 sps:$4 sm:$0xff]   ;;  %v4951_v42 = vld [vmem:[#allocation6 + $0x668] ss:$12 sps:$4 sm:$0xff]   ;;  %v361_v43 = vcombine.low %v346_v18, %v353_v41  ;;  %v4954_v18 = vld [vmem:[#allocation6 + $0x52c] ss:$12 sps:$4 sm:$0xff]  }
 0x14b   :  { %2847 = vmatprep.subr.bf16.mxu0 %v4844_v45  ;;  %v4892_v45 = vld [vmem:[#allocation6 + $0x408] ss:$12 sps:$4 sm:$0xff]  }
 0x14c   :  { %4451 = vmatpush3.bf16.msra.mxu1 %v4921_v63  ;;  %v368_v48 = vrot.slane %v361_v43, %v5730_v29 }
 0x14d   :  { %4452 = vmatprep.subr.bf16.mxu1 %v4925_v0 }
 0x14e   :  { %2848 = vmatpush1.bf16.msra.mxu0 %v4842_v46  ;;  %v4955_v46 = vld [vmem:[#allocation6 + $0x740] ss:$12 sps:$4 sm:$0xff]  }
 0x14f   :  { %2849 = vmatprep.subr.bf16.mxu0 %v4849_v49  ;;  %v4897_v49 = vld [vmem:[#allocation6 + $0x420] ss:$12 sps:$4 sm:$0xff]  }
 0x150   :  { %4453 = vmatpush3.bf16.msra.mxu1 %v4926_v3  ;;  %v4919_v3 = vld [vmem:[#allocation6 + $0x484] ss:$12 sps:$4 sm:$0xff]  }
 0x151   :  { %4460 = vmatprep.subr.bf16.mxu1 %v4930_v4 }
 0x152   :  { %2850 = vmatpush1.bf16.msra.mxu0 %v4847_v51  ;;  %v376_v51 = vcombine.low %v368_v48, %v375_v44  ;;  %v4959_v44 = vld [vmem:[#allocation6 + $0x544] ss:$12 sps:$4 sm:$0xff]   ;;  %v4957_v48 = vld [vmem:[#allocation6 + $0x540] ss:$12 sps:$4 sm:$0xff]  }
 0x153   :  { %2851 = vmatprep.subr.bf16.mxu0 %v4854_v53  ;;  %3203 = vmatmul.mubr.bf16.vlgmr.msra.gmra.mrb[12].mxu1 %v5780_v6  ;;  %v4904_v53 = vld [vmem:[#allocation6 + $0x43c] ss:$12 sps:$4 sm:$0xff]  }
 0x154   :  { %4461 = vmatpush3.bf16.msra.mxu1 %v4931_v7  ;;  %391 = vst.msk [vmem:[#allocation2 + $0x8] sm:$0x3f] %vm390_vm11, %v376_v51  ;;  %v4976_v7 = vld [vmem:[#allocation6 + $0x860] ss:$12 sps:$4 sm:$0xff]   ;;  %v5021_v51 = vld [vmem:[#allocation6 + $0x9f8] ss:$12 sps:$4 sm:$0xff]  }
 0x155   :  { %4462 = vmatprep.subr.bf16.mxu1 %v4935_v9  ;;  %v4917_v9 = vld [vmem:[#allocation6 + $0x480] ss:$12 sps:$4 sm:$0xff]  }
 0x156   :  { %2852 = vmatpush1.bf16.msra.mxu0 %v4852_v54  ;;  %v4902_v54 = vld [vmem:[#allocation6 + $0x438] ss:$12 sps:$4 sm:$0xff]  }
 0x157   :  { %2853 = vmatprep.subr.bf16.mxu0 %v4859_v58  ;;  %v4909_v58 = vld [vmem:[#allocation6 + $0x454] ss:$12 sps:$4 sm:$0xff]  }
 0x158   :  { %4463 = vmatpush3.bf16.msra.mxu1 %v4936_v12  ;;  %v4981_v12 = vld [vmem:[#allocation6 + $0x878] ss:$12 sps:$4 sm:$0xff]  }
 0x159   :  { %4464 = vmatprep.subr.bf16.mxu1 %v4940_v15  ;;  %v4929_v15 = vld [vmem:[#allocation6 + $0x4b4] ss:$12 sps:$4 sm:$0xff]  }
 0x15a   :  { %2854 = vmatpush1.bf16.msra.mxu0 %v4857_v59  ;;  %v4907_v59 = vld [vmem:[#allocation6 + $0x450] ss:$12 sps:$4 sm:$0xff]  }
 0x15b   :  { %2855 = vmatprep.subr.bf16.mxu0 %v4864_v61  ;;  %v5796_v60 = vld [vmem:[#allocation2 + $0x8] sm:$0x3f]  ;;  %v4971_v61 = vld [vmem:[#allocation6 + $0x848] ss:$12 sps:$4 sm:$0xff]  }
 0x15c   :  { %4465 = vmatpush3.bf16.msra.mxu1 %v4941_v23  ;;  %v917_v63 = vrot.slane %v5796_v60, %v5730_v29  ;;  %v4932_v23 = vld [vmem:[#allocation6 + $0x4c8] ss:$12 sps:$4 sm:$0xff]  }
 0x15d   :  { %4466 = vmatprep.subr.bf16.mxu1 %v4945_v27  ;;  %v4997_v27 = vld [vmem:[#allocation6 + $0x800] ss:$12 sps:$4 sm:$0xff]  }
 0x15e   :  { %2856 = vmatpush1.bf16.msra.mxu0 %v4862_v62  ;;  %v4914_v62 = vld [vmem:[#allocation6 + $0x46c] ss:$12 sps:$4 sm:$0xff]   ;;  %v925_v0 = vcombine.high %v917_v63, %v917_v63 }
 0x15f   :  { %2857 = vmatprep.subr.bf16.mxu0 %v4869_v1  ;;  %v4912_v1 = vld [vmem:[#allocation6 + $0x468] ss:$12 sps:$4 sm:$0xff]  }
 0x160   :  { %4467 = vmatpush3.bf16.msra.mxu1 %v4946_v34  ;;  %v5804_v4 = vrot.slane %v925_v0, %v5730_v29  ;;  %v5006_v34 = vld [vmem:[#allocation6 + $0x8f0] ss:$12 sps:$4 sm:$0xff]   ;;  %v5036_v0 = vld [vmem:[#allocation6 + $0xa40] ss:$12 sps:$4 sm:$0xff]  }
 0x161   :  { %4468 = vmatprep.subr.bf16.mxu1 %v4950_v35 }
 0x162   :  { %2858 = vmatpush1.bf16.msra.mxu0 %v4867_v2  ;;  %v5801_v2 = vrot.slane %v917_v63, %v5730_v29  ;;  %3242 = vmatprep.mubr.bf16.mxu1 %v5804_v4  ;;  %v4978_v63 = vld [vmem:[#allocation6 + $0x5a0] ss:$12 sps:$4 sm:$0xff]  }
 0x163   :  { %2859 = vmatprep.subr.bf16.mxu0 %v4874_v5  ;;  %v4972_v5 = vld [vmem:[#allocation6 + $0x788] ss:$12 sps:$4 sm:$0xff]  }
 0x164   :  { %4469 = vmatpush3.bf16.msra.mxu1 %v4951_v42  ;;  %v4952_v42 = vld [vmem:[#allocation6 + $0x528] ss:$12 sps:$4 sm:$0xff]   ;;  %v5824_v43 = vcombine.high %v5801_v2, %v5801_v2 }
 0x165   :  { %4470 = vmatprep.subr.bf16.mxu1 %v4955_v46  ;;  %v5016_v46 = vld [vmem:[#allocation6 + $0x9e0] ss:$12 sps:$4 sm:$0xff]  }
 0x166   :  { %2860 = vmatpush1.bf16.msra.mxu0 %v4872_v8  ;;  %v5809_v8 = vcombine.high %v5804_v4, %v5804_v4 }
 0x167   :  { %2861 = vmatprep.subr.bf16.mxu0 %v4879_v10  ;;  %v4924_v10 = vld [vmem:[#allocation6 + $0x49c] ss:$12 sps:$4 sm:$0xff]  }
 0x168   :  { %4471 = vmatpush3.bf16.msra.mxu1 %v4956_v50  ;;  %v5017_v50 = vld [vmem:[#allocation6 + $0x920] ss:$12 sps:$4 sm:$0xff]  }
 0x169   :  { %4472 = vmatprep.subr.bf16.mxu1 %v4960_v52  ;;  %v4962_v52 = vld [vmem:[#allocation6 + $0x558] ss:$12 sps:$4 sm:$0xff]  }
 0x16a   :  { %2862 = vmatpush1.bf16.msra.mxu0 %v4877_v11  ;;  %v4977_v11 = vld [vmem:[#allocation6 + $0x7a0] ss:$12 sps:$4 sm:$0xff]  }
 0x16b   :  { %2863 = vmatprep.subr.bf16.mxu0 %v4884_v14  ;;  %v4922_v14 = vld [vmem:[#allocation6 + $0x498] ss:$12 sps:$4 sm:$0xff]  }
 0x16c   :  { %4473 = vmatpush3.bf16.msra.mxu1 %v4961_v55  ;;  %v5026_v55 = vld [vmem:[#allocation6 + $0xa10] ss:$12 sps:$4 sm:$0xff]  }
 0x16d   :  { %4474 = vmatprep.subr.bf16.mxu1 %v4965_v56  ;;  %v4967_v56 = vld [vmem:[#allocation6 + $0x570] ss:$12 sps:$4 sm:$0xff]  }
 0x16e   :  { %2864 = vmatpush1.bf16.msra.mxu0 %v4882_v26  ;;  %v4944_v26 = vld [vmem:[#allocation6 + $0x4fc] ss:$12 sps:$4 sm:$0xff]  }
 0x16f   :  { %2865 = vmatprep.subr.bf16.mxu0 %v4889_v30  ;;  %v910_v30 = vcombine.high %v5796_v60, %v5796_v60  ;;  %v4973_v60 = vld [vmem:[#allocation6 + $0x588] ss:$12 sps:$4 sm:$0xff]  }
 0x170   :  { %4475 = vmatpush3.bf16.msra.mxu1 %v4966_v57  ;;  %v5031_v57 = vld [vmem:[#allocation6 + $0xa28] ss:$12 sps:$4 sm:$0xff]  }
 0x171   :  { %4482 = vmatprep.subr.bf16.mxu1 %v4971_v61  ;;  %v5818_v35 = vrot.slane %v910_v30, %v5730_v29  ;;  %v4980_v61 = vld [vmem:[#allocation6 + $0x5a4] ss:$12 sps:$4 sm:$0xff]   ;;  %v5033_v30 = vld [vmem:[#allocation6 + $0x6a8] ss:$12 sps:$4 sm:$0xff]  }
 0x172   :  { %2866 = vmatpush1.bf16.msra.mxu0 %v4887_v33  ;;  %v5002_v33 = vld [vmem:[#allocation6 + $0x818] ss:$12 sps:$4 sm:$0xff]  }
 0x173   :  { %2867 = vmatprep.subr.bf16.mxu0 %v4894_v40  ;;  %3243 = vmatmul.mubr.bf16.vlgmr.msra.gmra.mrb[16].mxu1 %v5801_v2  ;;  %v5011_v40 = vld [vmem:[#allocation6 + $0x9c8] ss:$12 sps:$4 sm:$0xff]   ;;  %v926_v41 = vcombine.high %v5818_v35, %v5818_v35 }
 0x174   :  { %4483 = vmatpush3.bf16.msra.mxu1 %v4972_v5  ;;  %3282 = vmatprep.mubr.bf16.mxu1 %v5809_v8  ;;  %v5041_v5 = vld [vmem:[#allocation6 + $0xa58] ss:$12 sps:$4 sm:$0xff]  }
 0x175   :  { %4484 = vmatprep.subr.bf16.mxu1 %v4976_v7  ;;  %v4983_v7 = vld [vmem:[#allocation6 + $0x5b8] ss:$12 sps:$4 sm:$0xff]  }
 0x176   :  { %2868 = vmatpush1.bf16.msra.mxu0 %v4892_v45  ;;  %v5012_v45 = vld [vmem:[#allocation6 + $0x908] ss:$12 sps:$4 sm:$0xff]  }
 0x177   :  { %2869 = vmatprep.subr.bf16.mxu0 %v4899_v47  ;;  %v5827_v47 = vrot.slane %v926_v41, %v5730_v29  ;;  %v5055_v41 = vld [vmem:[#allocation6 + $0x720] ss:$12 sps:$4 sm:$0xff]  }
 0x178   :  { %4485 = vmatpush3.bf16.msra.mxu1 %v4977_v11  ;;  %v5046_v11 = vld [vmem:[#allocation6 + $0xa70] ss:$12 sps:$4 sm:$0xff]  }
 0x179   :  { %4486 = vmatprep.subr.bf16.mxu1 %v4981_v12  ;;  %v4988_v12 = vld [vmem:[#allocation6 + $0x5d0] ss:$12 sps:$4 sm:$0xff]  }
 0x17a   :  { %2870 = vmatpush1.bf16.msra.mxu0 %v4897_v49  ;;  %v4964_v49 = vld [vmem:[#allocation6 + $0x55c] ss:$12 sps:$4 sm:$0xff]  }
 0x17b   :  { %2871 = vmatprep.subr.bf16.mxu0 %v4904_v53  ;;  %v4969_v53 = vld [vmem:[#allocation6 + $0x574] ss:$12 sps:$4 sm:$0xff]  }
 0x17c   :  { %4487 = vmatpush3.bf16.msra.mxu1 %v4982_v16  ;;  %v4993_v16 = vld [vmem:[#allocation6 + $0x5e8] ss:$12 sps:$4 sm:$0xff]  }
 0x17d   :  { %4488 = vmatprep.subr.bf16.mxu1 %v4986_v17  ;;  %v5000_v17 = vld [vmem:[#allocation6 + $0x604] ss:$12 sps:$4 sm:$0xff]  }
 0x17e   :  { %2872 = vmatpush1.bf16.msra.mxu0 %v4902_v54  ;;  %v5022_v54 = vld [vmem:[#allocation6 + $0x938] ss:$12 sps:$4 sm:$0xff]  }
 0x17f   :  { %2873 = vmatprep.subr.bf16.mxu0 %v4909_v58  ;;  %v4975_v58 = vld [vmem:[#allocation6 + $0x58c] ss:$12 sps:$4 sm:$0xff]  }
 0x180   :  { %4489 = vmatpush3.bf16.msra.mxu1 %v4987_v21  ;;  %v5005_v21 = vld [vmem:[#allocation6 + $0x61c] ss:$12 sps:$4 sm:$0xff]  }
 0x181   :  { %4490 = vmatprep.subr.bf16.mxu1 %v4991_v22  ;;  %v5003_v22 = vld [vmem:[#allocation6 + $0x618] ss:$12 sps:$4 sm:$0xff]  }
 0x182   :  { %2874 = vmatpush1.bf16.msra.mxu0 %v4907_v59  ;;  %v5027_v59 = vld [vmem:[#allocation6 + $0x950] ss:$12 sps:$4 sm:$0xff]  }
 0x183   :  { %2875 = vmatprep.subr.bf16.mxu0 %v4914_v62  ;;  %v5032_v62 = vld [vmem:[#allocation6 + $0x968] ss:$12 sps:$4 sm:$0xff]  }
 0x184   :  { %4491 = vmatpush3.bf16.msra.mxu1 %v4992_v24  ;;  %v5013_v24 = vld [vmem:[#allocation6 + $0x648] ss:$12 sps:$4 sm:$0xff]  }
 0x186   :  { %2876 = vmatpush1.bf16.msra.mxu0 %v4912_v1  ;;  %v4985_v1 = vld [vmem:[#allocation6 + $0x5bc] ss:$12 sps:$4 sm:$0xff]  }
 0x187   :  { %2886 = vmatprep.subr.bf16.mxu0 %v4919_v3  ;;  %v5037_v3 = vld [vmem:[#allocation6 + $0x980] ss:$12 sps:$4 sm:$0xff]  }
 0x189   :  { %2878 = vmatmul.mubr.bf16.vlgmr.msra.gmra.mrb[0].mxu0 %v5768_v36  ;;  %v4939_v36 = vld [vmem:[#allocation6 + $0x4e4] ss:$12 sps:$4 sm:$0xff]  }
 0x18a   :  { %2887 = vmatpush1.bf16.msra.mxu0 %v4917_v9  ;;  %2918 = vmatprep.mubr.bf16.mxu0 %v5772_v39  ;;  %v4996_v39 = vld [vmem:[#allocation6 + $0x8c0] ss:$12 sps:$4 sm:$0xff]  }
 0x18b   :  { %2888 = vmatprep.subr.bf16.mxu0 %v4924_v10  ;;  %4492 = vmatprep.subr.bf16.mxu1 %v4996_v39  ;;  %v4990_v9 = vld [vmem:[#allocation6 + $0x5d4] ss:$12 sps:$4 sm:$0xff]   ;;  %v5042_v10 = vld [vmem:[#allocation6 + $0x998] ss:$12 sps:$4 sm:$0xff]  }
 0x18c   :  { %4493 = vmatpush3.bf16.msra.mxu1 %v4997_v27  ;;  %v5020_v39 = vld [vmem:[#allocation6 + $0x664] ss:$12 sps:$4 sm:$0xff]   ;;  %v5030_v27 = vld [vmem:[#allocation6 + $0x694] ss:$12 sps:$4 sm:$0xff]  }
 0x18d   :  { %4494 = vmatprep.subr.bf16.mxu1 %v5001_v28  ;;  %v5028_v28 = vld [vmem:[#allocation6 + $0x690] ss:$12 sps:$4 sm:$0xff]  }
 0x18e   :  { %2889 = vmatpush1.bf16.msra.mxu0 %v4922_v14  ;;  %v4995_v14 = vld [vmem:[#allocation6 + $0x5ec] ss:$12 sps:$4 sm:$0xff]  }
 0x18f   :  { %2890 = vmatprep.subr.bf16.mxu0 %v4929_v15  ;;  %v5047_v15 = vld [vmem:[#allocation6 + $0x9b0] ss:$12 sps:$4 sm:$0xff]  }
 0x190   :  { %4495 = vmatpush3.bf16.msra.mxu1 %v5002_v33  ;;  %v5045_v33 = vld [vmem:[#allocation6 + $0x6dc] ss:$12 sps:$4 sm:$0xff]  }
 0x191   :  { %4496 = vmatprep.subr.bf16.mxu1 %v5006_v34  ;;  %v5043_v34 = vld [vmem:[#allocation6 + $0x6d8] ss:$12 sps:$4 sm:$0xff]  }
 0x192   :  { %2891 = vmatpush1.bf16.msra.mxu0 %v4927_v19  ;;  %v5833_v19 = vrot.slane %v5818_v35, %v5730_v29  ;;  %v5015_v29 = vld [vmem:[#allocation6 + $0x64c] ss:$12 sps:$4 sm:$0xff]   ;;  %v5050_v35 = vld [vmem:[#allocation6 + $0x6f4] ss:$12 sps:$4 sm:$0xff]  }
 0x193   :  { %2892 = vmatprep.subr.bf16.mxu0 %v4934_v20  ;;  %v4998_v20 = vld [vmem:[#allocation6 + $0x600] ss:$12 sps:$4 sm:$0xff]  }
 0x194   :  { %4497 = vmatpush3.bf16.msra.mxu1 %v5007_v38  ;;  %v5052_v38 = vld [vmem:[#allocation6 + $0x708] ss:$12 sps:$4 sm:$0xff]  }
 0x195   :  { %4504 = vmatprep.subr.bf16.mxu1 %v5011_v40  ;;  %v5057_v40 = vld [vmem:[#allocation6 + $0x724] ss:$12 sps:$4 sm:$0xff]  }
 0x196   :  { %2893 = vmatpush1.bf16.msra.mxu0 %v4932_v23  ;;  %v5010_v23 = vld [vmem:[#allocation6 + $0x634] ss:$12 sps:$4 sm:$0xff]  }
 0x197   :  { %2894 = vmatprep.subr.bf16.mxu0 %v4939_v36  ;;  %3283 = vmatmul.mubr.bf16.vlgmr.msra.gmra.mrb[20].mxu1 %v5824_v43  ;;  %v5008_v36 = vld [vmem:[#allocation6 + $0x630] ss:$12 sps:$4 sm:$0xff]  }
 0x198   :  { %4505 = vmatpush3.bf16.msra.mxu1 %v5012_v45  ;;  %3322 = vmatprep.mubr.bf16.mxu1 %v5827_v47  ;;  %v5063_v45 = vld [vmem:[#allocation6 + $0x754] ss:$12 sps:$4 sm:$0xff]  }
 0x199   :  { %4506 = vmatprep.subr.bf16.mxu1 %v5016_v46  ;;  %v5061_v46 = vld [vmem:[#allocation6 + $0x750] ss:$12 sps:$4 sm:$0xff]  }
 0x19a   :  { %2895 = vmatpush1.bf16.msra.mxu0 %v4937_v25  ;;  %v5018_v25 = vld [vmem:[#allocation6 + $0x660] ss:$12 sps:$4 sm:$0xff]  }
 0x19b   :  { %2896 = vmatprep.subr.bf16.mxu0 %v4944_v26  ;;  %v5025_v26 = vld [vmem:[#allocation6 + $0x67c] ss:$12 sps:$4 sm:$0xff]  }
 0x19c   :  { %4507 = vmatpush3.bf16.msra.mxu1 %v5017_v50  ;;  %v5069_v50 = vld [vmem:[#allocation6 + $0x784] ss:$12 sps:$4 sm:$0xff]  }
 0x19d   :  { %4508 = vmatprep.subr.bf16.mxu1 %v5021_v51  ;;  %v5067_v51 = vld [vmem:[#allocation6 + $0x780] ss:$12 sps:$4 sm:$0xff]  }
 0x19e   :  { %2897 = vmatpush1.bf16.msra.mxu0 %v4942_v31  ;;  %v5040_v31 = vld [vmem:[#allocation6 + $0x6c4] ss:$12 sps:$4 sm:$0xff]  }
 0x19f   :  { %2898 = vmatprep.subr.bf16.mxu0 %v4949_v32  ;;  %v5038_v32 = vld [vmem:[#allocation6 + $0x6c0] ss:$12 sps:$4 sm:$0xff]  }
 0x1a0   :  { %4509 = vmatpush3.bf16.msra.mxu1 %v5022_v54  ;;  %v5839_v54 = vld [vmem:[#allocation8] sm:$0x7] }
 0x1a1   :  { %4510 = vmatprep.subr.bf16.mxu1 %v5026_v55  ;;  %v854_v55 = vsub.s32 2, %v5722_v13 }
 0x1a2   :  { %2899 = vmatpush1.bf16.msra.mxu0 %v4947_v37  ;;  %v5048_v37 = vld [vmem:[#allocation6 + $0x6f0] ss:$12 sps:$4 sm:$0xff]  }
 0x1a3   :  { %2900 = vmatprep.subr.bf16.mxu0 %v4954_v18  ;;  %v5054_v18 = vld [vmem:[#allocation6 + $0x70c] ss:$12 sps:$4 sm:$0xff]  }
 0x1a4   :  { %4511 = vmatpush3.bf16.msra.mxu1 %v5027_v59  ;;  %v5075_v59 = vld [vmem:[#allocation6 + $0x7b4] ss:$12 sps:$4 sm:$0xff]  }
 0x1a5   :  { %4512 = vmatprep.subr.bf16.mxu1 %v5031_v57  ;;  %v855_v57 = vrot.slane %v5839_v54, %v854_v55  ;;  %v5106_v55 = vld [vmem:[#allocation6 + $0x8b8] ss:$12 sps:$4 sm:$0xff]  }
 0x1a6   :  { %2901 = vmatpush1.bf16.msra.mxu0 %v4952_v42  ;;  %v5060_v42 = vld [vmem:[#allocation6 + $0x73c] ss:$12 sps:$4 sm:$0xff]  }
 0x1a7   :  { %2902 = vmatprep.subr.bf16.mxu0 %v4959_v44  ;;  %v5058_v44 = vld [vmem:[#allocation6 + $0x738] ss:$12 sps:$4 sm:$0xff]  }
 0x1a8   :  { %4513 = vmatpush3.bf16.msra.mxu1 %v5032_v62 }
 0x1a9   :  { %4514 = vmatprep.subr.bf16.mxu1 %v5036_v0 }
 0x1aa   :  { %2903 = vmatpush1.bf16.msra.mxu0 %v4957_v48  ;;  %v5066_v48 = vld [vmem:[#allocation6 + $0x76c] ss:$12 sps:$4 sm:$0xff]  }
 0x1ab   :  { %2904 = vmatprep.subr.bf16.mxu0 %v4964_v49  ;;  %v5064_v49 = vld [vmem:[#allocation6 + $0x768] ss:$12 sps:$4 sm:$0xff]  }
 0x1ac   :  { %4515 = vmatpush3.bf16.msra.mxu1 %v5037_v3  ;;  %v5078_v3 = vld [vmem:[#allocation6 + $0x7cc] ss:$12 sps:$4 sm:$0xff]  }
 0x1ad   :  { %4516 = vmatprep.subr.bf16.mxu1 %v5041_v5 }
 0x1ae   :  { %2905 = vmatpush1.bf16.msra.mxu0 %v4962_v52  ;;  %v5072_v52 = vld [vmem:[#allocation6 + $0x79c] ss:$12 sps:$4 sm:$0xff]  }
 0x1af   :  { %2906 = vmatprep.subr.bf16.mxu0 %v4969_v53 }
 0x1b0   :  { %4517 = vmatpush3.bf16.msra.mxu1 %v5042_v10 }
 0x1b1   :  { %4518 = vmatprep.subr.bf16.mxu1 %v5046_v11  ;;  %v5081_v11 = vld [vmem:[#allocation6 + $0x7e4] ss:$12 sps:$4 sm:$0xff]  }
 0x1b2   :  { %2907 = vmatpush1.bf16.msra.mxu0 %v4967_v56  ;;  %v5070_v56 = vld [vmem:[#allocation6 + $0x798] ss:$12 sps:$4 sm:$0xff]  }
 0x1b3   :  { %2908 = vmatprep.subr.bf16.mxu0 %v4975_v58 }
 0x1b4   :  { %4519 = vmatpush3.bf16.msra.mxu1 %v5047_v15 }
 0x1b6   :  { %2909 = vmatpush1.bf16.msra.mxu0 %v4973_v60 }
 0x1b7   :  { %2910 = vmatprep.subr.bf16.mxu0 %v4980_v61  ;;  %3323 = vmatmul.mubr.bf16.vlgmr.msra.gmra.mrb[24].mxu1 %v5833_v19 }
 0x1ba   :  { %2911 = vmatpush1.bf16.msra.mxu0 %v4978_v63 }
 0x1bb   :  { %2912 = vmatprep.subr.bf16.mxu0 %v4985_v1 }
 0x1be   :  { %2913 = vmatpush1.bf16.msra.mxu0 %v4983_v7 }
 0x1bf   :  { %2914 = vmatprep.subr.bf16.mxu0 %v4990_v9 }
 0x1c2   :  { %2915 = vmatpush1.bf16.msra.mxu0 %v4988_v12  ;;  %v5079_v12 = vld [vmem:[#allocation6 + $0x7e0] ss:$12 sps:$4 sm:$0xff]  }
 0x1c3   :  { %2916 = vmatprep.subr.bf16.mxu0 %v4995_v14  ;;  %v5084_v14 = vld [vmem:[#allocation6 + $0x7fc] ss:$12 sps:$4 sm:$0xff]  }
 0x1c6   :  { %2917 = vmatpush1.bf16.msra.mxu0 %v4993_v16  ;;  %v4388_v53 = vpop.f32.mrb[0].mxu1 }
 0x1c7   :  { %2927 = vmatprep.subr.bf16.mxu0 %v5000_v17  ;;  %v4389_v58 = vpop.f32.mrb[1].mxu1 }
 0x1c8   :  { %v4390_v60 = vadd.f32 %v4389_v58, %v4388_v53  ;;  %v4391_v61 = vpop.f32.mrb[2].mxu1  ;;  %v5111_v58 = vld [vmem:[#allocation6 + $0x8d4] ss:$12 sps:$4 sm:$0xff]  }
 0x1c9   :  { %2919 = vmatmul.mubr.bf16.vlgmr.msra.gmra.mrb[0].mxu0 %v5780_v6  ;;  %v5023_v6 = vld [vmem:[#allocation6 + $0x678] ss:$12 sps:$4 sm:$0xff]   ;;  %v4392_v62 = vpop.f32.mrb[3].mxu1  ;;  %v5112_v61 = vld [vmem:[#allocation6 + $0x8e8] ss:$12 sps:$4 sm:$0xff]  }
 0x1ca   :  { %2928 = vmatpush1.bf16.msra.mxu0 %v4998_v20  ;;  %2959 = vmatprep.mubr.bf16.mxu0 %v5804_v4  ;;  %v5035_v4 = vld [vmem:[#allocation6 + $0x6ac] ss:$12 sps:$4 sm:$0xff]   ;;  %v3085_v63 = vadd.f32 %v4390_v60, %v855_v57  ;;  %v5109_v57 = vld [vmem:[#allocation6 + $0x8d0] ss:$12 sps:$4 sm:$0xff]  }
 0x1cb   :  { %2929 = vmatprep.subr.bf16.mxu0 %v5005_v21  ;;  %v5082_v21 = vld [vmem:[#allocation6 + $0x7f8] ss:$12 sps:$4 sm:$0xff]  }
 0x1cc   :  { %v5114_v60 = vld [vmem:[#allocation6 + $0x8ec] ss:$12 sps:$4 sm:$0xff]   ;;  %v5117_v62 = vld [vmem:[#allocation6 + $0x904] ss:$12 sps:$4 sm:$0xff]  }
 0x1ce   :  { %2930 = vmatpush1.bf16.msra.mxu0 %v5003_v22 }
 0x1cf   :  { %2931 = vmatprep.subr.bf16.mxu0 %v5010_v23  ;;  %v5087_v23 = vld [vmem:[#allocation6 + $0x814] ss:$12 sps:$4 sm:$0xff]  }
 0x1d2   :  { %2932 = vmatpush1.bf16.msra.mxu0 %v5008_v36 }
 0x1d3   :  { %2933 = vmatprep.subr.bf16.mxu0 %v5015_v29  ;;  %v5085_v29 = vld [vmem:[#allocation6 + $0x810] ss:$12 sps:$4 sm:$0xff]  }
 0x1d6   :  { %2934 = vmatpush1.bf16.msra.mxu0 %v5013_v24  ;;  %v5090_v24 = vld [vmem:[#allocation6 + $0x82c] ss:$12 sps:$4 sm:$0xff]  }
 0x1d7   :  { %2935 = vmatprep.subr.bf16.mxu0 %v5020_v39  ;;  %v5163_v39 = vld [vmem:[#allocation9 + $0x40] sm:$0xff]  }
 0x1d8   :  { %4526 = vmatprep.subr.bf16.mxu1 %v5163_v39  ;;  %v5147_v39 = vld [vmem:[#allocation6 + $0x9f4] ss:$12 sps:$4 sm:$0xff]  }
 0x1da   :  { %2936 = vmatpush1.bf16.msra.mxu0 %v5018_v25  ;;  %v5164_v25 = vld [vmem:[#allocation9] sm:$0xff]  }
 0x1db   :  { %2937 = vmatprep.subr.bf16.mxu0 %v5025_v26  ;;  %v5165_v26 = vld [vmem:[#allocation9 + $0x48] sm:$0xff]   ;;  %4527 = vmatpush3.bf16.msra.mxu1 %v5164_v25 }
 0x1dc   :  { %4528 = vmatprep.subr.bf16.mxu1 %v5165_v26  ;;  %v5145_v25 = vld [vmem:[#allocation6 + $0x9f0] ss:$12 sps:$4 sm:$0xff]   ;;  %v5150_v26 = vld [vmem:[#allocation6 + $0xa0c] ss:$12 sps:$4 sm:$0xff]  }
 0x1de   :  { %2938 = vmatpush1.bf16.msra.mxu0 %v5023_v6  ;;  %v5088_v6 = vld [vmem:[#allocation6 + $0x828] ss:$12 sps:$4 sm:$0xff]  }
 0x1df   :  { %2939 = vmatprep.subr.bf16.mxu0 %v5030_v27  ;;  %v5093_v27 = vld [vmem:[#allocation6 + $0x844] ss:$12 sps:$4 sm:$0xff]  }
 0x1e2   :  { %2940 = vmatpush1.bf16.msra.mxu0 %v5028_v28  ;;  %v5166_v28 = vld [vmem:[#allocation9 + $0x8] sm:$0xff]  }
 0x1e3   :  { %2941 = vmatprep.subr.bf16.mxu0 %v5035_v4  ;;  %v5167_v4 = vld [vmem:[#allocation9 + $0x50] sm:$0xff]   ;;  %4529 = vmatpush3.bf16.msra.mxu1 %v5166_v28  ;;  %v5151_v28 = vld [vmem:[#allocation6 + $0xa20] ss:$12 sps:$4 sm:$0xff]  }
 0x1e4   :  { %4530 = vmatprep.subr.bf16.mxu1 %v5167_v4  ;;  %v5156_v4 = vld [vmem:[#allocation6 + $0xa3c] ss:$12 sps:$4 sm:$0xff]  }
 0x1e6   :  { %2942 = vmatpush1.bf16.msra.mxu0 %v5033_v30  ;;  %v4410_v0 = vpop.f32.mrb[4].mxu1  ;;  %v5091_v30 = vld [vmem:[#allocation6 + $0x840] ss:$12 sps:$4 sm:$0xff]  }
 0x1e7   :  { %2943 = vmatprep.subr.bf16.mxu0 %v5040_v31  ;;  %v4411_v1 = vpop.f32.mrb[5].mxu1  ;;  %v5096_v31 = vld [vmem:[#allocation6 + $0x85c] ss:$12 sps:$4 sm:$0xff]  }
 0x1e8   :  { %v4412_v5 = vadd.f32 %v4411_v1, %v4410_v0  ;;  %v4413_v7 = vpop.f32.mrb[6].mxu1  ;;  %v5120_v0 = vld [vmem:[#allocation6 + $0x91c] ss:$12 sps:$4 sm:$0xff]   ;;  %v5123_v1 = vld [vmem:[#allocation6 + $0x934] ss:$12 sps:$4 sm:$0xff]  }
 0x1e9   :  { %v4414_v9 = vpop.f32.mrb[7].mxu1  ;;  %v5124_v7 = vld [vmem:[#allocation6 + $0x948] ss:$12 sps:$4 sm:$0xff]  }
 0x1ea   :  { %2944 = vmatpush1.bf16.msra.mxu0 %v5038_v32  ;;  %v3125_v10 = vadd.f32 %v4412_v5, %v3085_v63  ;;  %v5168_v32 = vld [vmem:[#allocation9 + $0x10] sm:$0xff]   ;;  %v5115_v63 = vld [vmem:[#allocation6 + $0x900] ss:$12 sps:$4 sm:$0xff]   ;;  %v5129_v9 = vld [vmem:[#allocation6 + $0x964] ss:$12 sps:$4 sm:$0xff]  }
 0x1eb   :  { %2945 = vmatprep.subr.bf16.mxu0 %v5045_v33  ;;  %v5169_v33 = vld [vmem:[#allocation9 + $0x58] sm:$0xff]   ;;  %4531 = vmatpush3.bf16.msra.mxu1 %v5168_v32  ;;  %v5126_v5 = vld [vmem:[#allocation6 + $0x94c] ss:$12 sps:$4 sm:$0xff]  }
 0x1ec   :  { %4532 = vmatprep.subr.bf16.mxu1 %v5169_v33  ;;  %v5159_v33 = vld [vmem:[#allocation6 + $0xa54] ss:$12 sps:$4 sm:$0xff]  }
 0x1ee   :  { %2946 = vmatpush1.bf16.msra.mxu0 %v5043_v34  ;;  %v5094_v34 = vld [vmem:[#allocation6 + $0x858] ss:$12 sps:$4 sm:$0xff]  }
 0x1ef   :  { %2947 = vmatprep.subr.bf16.mxu0 %v5050_v35  ;;  %v5099_v35 = vld [vmem:[#allocation6 + $0x874] ss:$12 sps:$4 sm:$0xff]  }
 0x1f2   :  { %2948 = vmatpush1.bf16.msra.mxu0 %v5048_v37  ;;  %v5170_v37 = vld [vmem:[#allocation9 + $0x18] sm:$0xff]  }
 0x1f3   :  { %2949 = vmatprep.subr.bf16.mxu0 %v5054_v18  ;;  %v5171_v18 = vld [vmem:[#allocation9 + $0x60] sm:$0xff]   ;;  %4533 = vmatpush3.bf16.msra.mxu1 %v5170_v37 }
 0x1f4   :  { %4534 = vmatprep.subr.bf16.mxu1 %v5171_v18 }
 0x1f6   :  { %2950 = vmatpush1.bf16.msra.mxu0 %v5052_v38  ;;  %v5097_v38 = vld [vmem:[#allocation6 + $0x870] ss:$12 sps:$4 sm:$0xff]  }
 0x1f7   :  { %2951 = vmatprep.subr.bf16.mxu0 %v5057_v40  ;;  %v5102_v40 = vld [vmem:[#allocation6 + $0x88c] ss:$12 sps:$4 sm:$0xff]  }
 0x1fa   :  { %2952 = vmatpush1.bf16.msra.mxu0 %v5055_v41  ;;  %v5172_v41 = vld [vmem:[#allocation9 + $0x20] sm:$0xff]  }
 0x1fb   :  { %2953 = vmatprep.subr.bf16.mxu0 %v5060_v42  ;;  %v5173_v42 = vld [vmem:[#allocation9 + $0x68] sm:$0xff]   ;;  %4535 = vmatpush3.bf16.msra.mxu1 %v5172_v41  ;;  %v5160_v41 = vld [vmem:[#allocation6 + $0xa68] ss:$12 sps:$4 sm:$0xff]  }
 0x1fc   :  { %4536 = vmatprep.subr.bf16.mxu1 %v5173_v42 }
 0x1fe   :  { %2954 = vmatpush1.bf16.msra.mxu0 %v5058_v44  ;;  %v5100_v44 = vld [vmem:[#allocation6 + $0x888] ss:$12 sps:$4 sm:$0xff]  }
 0x1ff   :  { %2955 = vmatprep.subr.bf16.mxu0 %v5063_v45  ;;  %v5105_v45 = vld [vmem:[#allocation6 + $0x8a4] ss:$12 sps:$4 sm:$0xff]  }
 0x202   :  { %2956 = vmatpush1.bf16.msra.mxu0 %v5061_v46  ;;  %v5174_v46 = vld [vmem:[#allocation9 + $0x28] sm:$0xff]  }
 0x203   :  { %2957 = vmatprep.subr.bf16.mxu0 %v5066_v48  ;;  %v5103_v48 = vld [vmem:[#allocation6 + $0x8a0] ss:$12 sps:$4 sm:$0xff]   ;;  %4537 = vmatpush3.bf16.msra.mxu1 %v5174_v46 }
 0x206   :  { %2958 = vmatpush1.bf16.msra.mxu0 %v5064_v49  ;;  %v4432_v15 = vpop.f32.mrb[8].mxu1  ;;  %v5108_v49 = vld [vmem:[#allocation6 + $0x8bc] ss:$12 sps:$4 sm:$0xff]  }
 0x207   :  { %2968 = vmatprep.subr.bf16.mxu0 %v5069_v50  ;;  %v4433_v16 = vpop.f32.mrb[9].mxu1 }
 0x208   :  { %v4434_v17 = vadd.f32 %v4433_v16, %v4432_v15  ;;  %v4435_v20 = vpop.f32.mrb[10].mxu1 }
 0x209   :  { %2960 = vmatmul.mubr.bf16.vlgmr.msra.gmra.mrb[0].mxu0 %v5801_v2  ;;  %v5073_v2 = vld [vmem:[#allocation6 + $0x7b0] ss:$12 sps:$4 sm:$0xff]   ;;  %v4436_v22 = vpop.f32.mrb[11].mxu1 }
 0x20a   :  { %2969 = vmatpush1.bf16.msra.mxu0 %v5067_v51  ;;  %3000 = vmatprep.mubr.bf16.mxu0 %v5809_v8  ;;  %v5076_v8 = vld [vmem:[#allocation6 + $0x7c8] ss:$12 sps:$4 sm:$0xff]   ;;  %v3165_v36 = vadd.f32 %v4434_v17, %v3125_v10  ;;  %v5127_v10 = vld [vmem:[#allocation6 + $0x960] ss:$12 sps:$4 sm:$0xff]   ;;  %v5133_v20 = vld [vmem:[#allocation6 + $0x990] ss:$12 sps:$4 sm:$0xff]  }
 0x20b   :  { %2970 = vmatprep.subr.bf16.mxu0 %v5072_v52  ;;  %v5136_v22 = vld [vmem:[#allocation6 + $0x9a8] ss:$12 sps:$4 sm:$0xff]  }
 0x20e   :  { %2971 = vmatpush1.bf16.msra.mxu0 %v5070_v56 }
 0x20f   :  { %2972 = vmatprep.subr.bf16.mxu0 %v5075_v59 }
 0x212   :  { %2973 = vmatpush1.bf16.msra.mxu0 %v5073_v2  ;;  %v5118_v2 = vld [vmem:[#allocation6 + $0x918] ss:$12 sps:$4 sm:$0xff]  }
 0x213   :  { %2974 = vmatprep.subr.bf16.mxu0 %v5078_v3  ;;  %v5121_v3 = vld [vmem:[#allocation6 + $0x930] ss:$12 sps:$4 sm:$0xff]  }
 0x216   :  { %2975 = vmatpush1.bf16.msra.mxu0 %v5076_v8  ;;  %v5132_v8 = vld [vmem:[#allocation6 + $0x97c] ss:$12 sps:$4 sm:$0xff]  }
 0x217   :  { %2976 = vmatprep.subr.bf16.mxu0 %v5081_v11 }
 0x21a   :  { %2977 = vmatpush1.bf16.msra.mxu0 %v5079_v12 }
 0x21b   :  { %2978 = vmatprep.subr.bf16.mxu0 %v5084_v14 }
 0x21e   :  { %2979 = vmatpush1.bf16.msra.mxu0 %v5082_v21  ;;  %v5138_v21 = vld [vmem:[#allocation6 + $0x9ac] ss:$12 sps:$4 sm:$0xff]  }
 0x21f   :  { %2980 = vmatprep.subr.bf16.mxu0 %v5087_v23  ;;  %v5141_v23 = vld [vmem:[#allocation6 + $0x9c4] ss:$12 sps:$4 sm:$0xff]  }
 0x222   :  { %2981 = vmatpush1.bf16.msra.mxu0 %v5085_v29  ;;  %v5144_v29 = vld [vmem:[#allocation6 + $0x9dc] ss:$12 sps:$4 sm:$0xff]  }
 0x223   :  { %2982 = vmatprep.subr.bf16.mxu0 %v5090_v24  ;;  %v5142_v24 = vld [vmem:[#allocation6 + $0x9d8] ss:$12 sps:$4 sm:$0xff]  }
 0x226   :  { %2983 = vmatpush1.bf16.msra.mxu0 %v5088_v6  ;;  %v4454_v50 = vpop.f32.mrb[12].mxu1  ;;  %v5148_v6 = vld [vmem:[#allocation6 + $0xa08] ss:$12 sps:$4 sm:$0xff]  }
 0x227   :  { %2984 = vmatprep.subr.bf16.mxu0 %v5093_v27  ;;  %v4455_v51 = vpop.f32.mrb[13].mxu1  ;;  %v5153_v27 = vld [vmem:[#allocation6 + $0xa24] ss:$12 sps:$4 sm:$0xff]  }
 0x228   :  { %v4456_v52 = vadd.f32 %v4455_v51, %v4454_v50  ;;  %v4457_v53 = vpop.f32.mrb[14].mxu1  ;;  %v5175_v50 = vld [vmem:[#allocation9 + $0x70] sm:$0xff]  }
 0x229   :  { %v4458_v56 = vpop.f32.mrb[15].mxu1  ;;  %v5176_v51 = vld [vmem:[#allocation9 + $0x30] sm:$0xff]   ;;  %4538 = vmatprep.subr.bf16.mxu1 %v5175_v50  ;;  %v5178_v53 = vld [vmem:[#allocation9 + $0x38] sm:$0xff]  }
 0x22a   :  { %2985 = vmatpush1.bf16.msra.mxu0 %v5091_v30  ;;  %v3205_v59 = vadd.f32 %v4456_v52, %v3165_v36  ;;  %v5139_v36 = vld [vmem:[#allocation6 + $0x9c0] ss:$12 sps:$4 sm:$0xff]   ;;  %4539 = vmatpush3.bf16.msra.mxu1 %v5176_v51  ;;  %v846_v56 = vsub.s32 0, %v5722_v13 }
 0x22b   :  { %2986 = vmatprep.subr.bf16.mxu0 %v5096_v31  ;;  %v5154_v31 = vld [vmem:[#allocation6 + $0xa38] ss:$12 sps:$4 sm:$0xff]   ;;  %v5177_v52 = vld [vmem:[#allocation9 + $0x78] sm:$0xff]  }
 0x22c   :  { %4540 = vmatprep.subr.bf16.mxu1 %v5177_v52  ;;  %v5203_v52 = vld [vmem:[#allocation18] sm:$0xff]  }
 0x22e   :  { %2987 = vmatpush1.bf16.msra.mxu0 %v5094_v34  ;;  %4541 = vmatpush3.bf16.msra.mxu1 %v5178_v53 }
 0x22f   :  { %2988 = vmatprep.subr.bf16.mxu0 %v5099_v35 }
 0x232   :  { %2989 = vmatpush1.bf16.msra.mxu0 %v5097_v38  ;;  %v5157_v38 = vld [vmem:[#allocation6 + $0xa50] ss:$12 sps:$4 sm:$0xff]  }
 0x233   :  { %2990 = vmatprep.subr.bf16.mxu0 %v5102_v40  ;;  %v5162_v40 = vld [vmem:[#allocation6 + $0xa6c] ss:$12 sps:$4 sm:$0xff]  }
 0x236   :  { %2991 = vmatpush1.bf16.msra.mxu0 %v5100_v44 }
 0x237   :  { %2992 = vmatprep.subr.bf16.mxu0 %v5105_v45 }
 0x23a   :  { %2993 = vmatpush1.bf16.msra.mxu0 %v5103_v48 }
 0x23b   :  { %2994 = vmatprep.subr.bf16.mxu0 %v5108_v49 }
 0x23e   :  { %2995 = vmatpush1.bf16.msra.mxu0 %v5106_v55  ;;  %v5508_v55 = vmov 0.0  }
 0x23f   :  { %2996 = vmatprep.subr.bf16.mxu0 %v5111_v58  ;;  %4584 = vmatprep.subr.bf16.mxu1 %v5508_v55  ;;  %v847_v58 = vrot.slane %v5839_v54, %v846_v56  ;;  %v5204_v56 = vld [vmem:[#allocation18 + $0x8] sm:$0xff]  }
 0x242   :  { %2997 = vmatpush1.bf16.msra.mxu0 %v5109_v57 }
 0x243   :  { %2998 = vmatprep.subr.bf16.mxu0 %v5114_v60 }
 0x246   :  { %2999 = vmatpush1.bf16.msra.mxu0 %v5112_v61  ;;  %v4476_v11 = vpop.f32.mrb[16].mxu1 }
 0x247   :  { %3009 = vmatprep.subr.bf16.mxu0 %v5117_v62  ;;  %v4477_v12 = vpop.f32.mrb[17].mxu1 }
 0x248   :  { %v4478_v14 = vadd.f32 %v4477_v12, %v4476_v11  ;;  %v4479_v15 = vpop.f32.mrb[18].mxu1  ;;  %v5185_v11 = vld [vmem:[#allocation9 + $0xb0] sm:$0xff]  }
 0x249   :  { %3001 = vmatmul.mubr.bf16.vlgmr.msra.gmra.mrb[0].mxu0 %v5824_v43  ;;  %v5130_v43 = vld [vmem:[#allocation6 + $0x978] ss:$12 sps:$4 sm:$0xff]   ;;  %v4480_v16 = vpop.f32.mrb[19].mxu1  ;;  %v5188_v15 = vld [vmem:[#allocation12 + $0x8] sm:$0xff]  }
 0x24a   :  { %3010 = vmatpush1.bf16.msra.mxu0 %v5115_v63  ;;  %3041 = vmatprep.mubr.bf16.mxu0 %v5827_v47  ;;  %v5135_v47 = vld [vmem:[#allocation6 + $0x994] ss:$12 sps:$4 sm:$0xff]   ;;  %v3245_v17 = vadd.f32 %v4478_v14, %v3205_v59  ;;  %v5187_v14 = vld [vmem:[#allocation12] sm:$0xff]  }
 0x24b   :  { %3011 = vmatprep.subr.bf16.mxu0 %v5120_v0  ;;  %v5189_v16 = vld [vmem:[#allocation12 + $0x10] sm:$0xff]  }
 0x24e   :  { %3012 = vmatpush1.bf16.msra.mxu0 %v5118_v2 }
 0x24f   :  { %3013 = vmatprep.subr.bf16.mxu0 %v5123_v1 }
 0x252   :  { %3014 = vmatpush1.bf16.msra.mxu0 %v5121_v3 }
 0x253   :  { %3015 = vmatprep.subr.bf16.mxu0 %v5126_v5  ;;  %v5179_v5 = vld [vmem:[#allocation9 + $0x80] sm:$0xff]  }
 0x256   :  { %3016 = vmatpush1.bf16.msra.mxu0 %v5124_v7 }
 0x257   :  { %3017 = vmatprep.subr.bf16.mxu0 %v5129_v9  ;;  %v5180_v9 = vld [vmem:[#allocation9 + $0x88] sm:$0xff]  }
 0x25a   :  { %3018 = vmatpush1.bf16.msra.mxu0 %v5127_v10  ;;  %v5183_v10 = vld [vmem:[#allocation9 + $0xa0] sm:$0xff]  }
 0x25b   :  { %3019 = vmatprep.subr.bf16.mxu0 %v5132_v8  ;;  %v5184_v8 = vld [vmem:[#allocation9 + $0xa8] sm:$0xff]  }
 0x25e   :  { %3020 = vmatpush1.bf16.msra.mxu0 %v5130_v43  ;;  %v5186_v43 = vld [vmem:[#allocation9 + $0xb8] sm:$0xff]  }
 0x25f   :  { %3021 = vmatprep.subr.bf16.mxu0 %v5135_v47 }
 0x262   :  { %3022 = vmatpush1.bf16.msra.mxu0 %v5133_v20  ;;  %v5191_v20 = vld [vmem:[#allocation12 + $0x20] sm:$0xff]  }
 0x263   :  { %3023 = vmatprep.subr.bf16.mxu0 %v5138_v21  ;;  %v5192_v21 = vld [vmem:[#allocation12 + $0x28] sm:$0xff]  }
 0x266   :  { %3024 = vmatpush1.bf16.msra.mxu0 %v5136_v22  ;;  %v5193_v22 = vld [vmem:[#allocation12 + $0x30] sm:$0xff]  }
 0x267   :  { %3025 = vmatprep.subr.bf16.mxu0 %v5141_v23  ;;  %v5194_v23 = vld [vmem:[#allocation12 + $0x38] sm:$0xff]  }
 0x26a   :  { %3026 = vmatpush1.bf16.msra.mxu0 %v5139_v36  ;;  %v4498_v30 = vpop.f32.mrb[20].mxu1 }
 0x26b   :  { %3027 = vmatprep.subr.bf16.mxu0 %v5144_v29  ;;  %v4499_v32 = vpop.f32.mrb[21].mxu1 }
 0x26c   :  { %v4500_v34 = vadd.f32 %v4499_v32, %v4498_v30  ;;  %v4501_v35 = vpop.f32.mrb[22].mxu1 }
 0x26d   :  { %v4502_v37 = vpop.f32.mrb[23].mxu1  ;;  %v5196_v35 = vld [vmem:[#allocation15 + $0x8] sm:$0xff]  }
 0x26e   :  { %3028 = vmatpush1.bf16.msra.mxu0 %v5142_v24  ;;  %v3285_v18 = vadd.f32 %v4500_v34, %v3245_v17  ;;  %v5190_v17 = vld [vmem:[#allocation12 + $0x18] sm:$0xff]  }
 0x26f   :  { %3029 = vmatprep.subr.bf16.mxu0 %v5147_v39  ;;  %v5197_v37 = vld [vmem:[#allocation15 + $0x10] sm:$0xff]  }
 0x272   :  { %3030 = vmatpush1.bf16.msra.mxu0 %v5145_v25 }
 0x273   :  { %3031 = vmatprep.subr.bf16.mxu0 %v5150_v26  ;;  %v4320_v26 = vld [vmem:[#allocation11] ss:$0 sm:$0xff] }
 0x276   :  { %3032 = vmatpush1.bf16.msra.mxu0 %v5148_v6 }
 0x277   :  { %3033 = vmatprep.subr.bf16.mxu0 %v5153_v27 }
 0x27a   :  { %3034 = vmatpush1.bf16.msra.mxu0 %v5151_v28 }
 0x27b   :  { %3035 = vmatprep.subr.bf16.mxu0 %v5156_v4 }
 0x27e   :  { %3036 = vmatpush1.bf16.msra.mxu0 %v5154_v31 }
 0x27f   :  { %3037 = vmatprep.subr.bf16.mxu0 %v5159_v33  ;;  %v5195_v33 = vld [vmem:[#allocation15] sm:$0xff]  }
 0x282   :  { %3038 = vmatpush1.bf16.msra.mxu0 %v5157_v38  ;;  %v5199_v38 = vld [vmem:[#allocation15 + $0x20] sm:$0xff]  }
 0x283   :  { %3039 = vmatprep.subr.bf16.mxu0 %v5162_v40  ;;  %v5200_v40 = vld [vmem:[#allocation15 + $0x28] sm:$0xff]  }
 0x286   :  { %3040 = vmatpush1.bf16.msra.mxu0 %v5160_v41  ;;  %v5201_v41 = vld [vmem:[#allocation15 + $0x30] sm:$0xff]  }
 0x289   :  { %3042 = vmatmul.mubr.bf16.vlgmr.msra.gmra.mrb[0].mxu0 %v5833_v19  ;;  %v850_v19 = vsub.s32 1, %v5722_v13  ;;  %v5181_v13 = vld [vmem:[#allocation9 + $0x90] sm:$0xff]  }
 0x28a   :  { %v4520_v42 = vpop.f32.mrb[24].mxu1 }
 0x28b   :  { %v4521_v44 = vpop.f32.mrb[25].mxu1  ;;  %v851_v59 = vrot.slane %v5839_v54, %v850_v19  ;;  %v5182_v54 = vld [vmem:[#allocation9 + $0x98] sm:$0xff]  }
 0x28c   :  { %v4522_v45 = vadd.f32 %v4521_v44, %v4520_v42  ;;  %v4523_v46 = vpop.f32.mrb[26].mxu1  ;;  %v5202_v42 = vld [vmem:[#allocation15 + $0x38] sm:$0xff]  }
 0x28d   :  { %v4524_v48 = vpop.f32.mrb[27].mxu1  ;;  %v4345_v44 = vld [vmem:[#allocation14] ss:$0 sm:$0xff]  ;;  %v5205_v19 = vld [vmem:[#allocation18 + $0x10] sm:$0xff]  }
 0x28e   :  { %v3325_v49 = vadd.f32 %v4522_v45, %v3285_v18  ;;  %v5198_v18 = vld [vmem:[#allocation15 + $0x18] sm:$0xff]  }
 0x290   :  { %v3332_v12 = vmax.f32 %v3325_v49, 0.0 }
 0x292   :  { %v3335_v47 = vpack.c.bf16 %v3332_v12, %v3332_v12 }
 0x35c   :  { %v3043_v57 = vpop.f32.mrb[0].mxu0 }
 0x35d   :  { %v4664_v60 = vadd.f32 %v3043_v57, %v847_v58  ;;  %v3045_v61 = vpop.f32.mrb[1].mxu0  ;;  %v5206_v58 = vld [vmem:[#allocation18 + $0x18] sm:$0xff]   ;;  %v5208_v57 = vld [vmem:[#allocation18 + $0x28] sm:$0xff]  }
 0x35e   :  { %v4665_v62 = vadd.f32 %v3045_v61, %v851_v59  ;;  %v3047_v63 = vpop.f32.mrb[2].mxu0  ;;  %v5207_v59 = vld [vmem:[#allocation18 + $0x20] sm:$0xff]   ;;  %v5210_v61 = vld [vmem:[#allocation18 + $0x38] sm:$0xff]  }
 0x35f   :  { %v3330_v0 = vmax.f32 %v4664_v60, 0.0  ;;  %v3048_v2 = vpop.f32.mrb[3].mxu0  ;;  %v5209_v60 = vld [vmem:[#allocation18 + $0x30] sm:$0xff]  }
 0x360   :  { %v3331_v1 = vmax.f32 %v4665_v62, 0.0  ;;  %v4354_v62 = vld [vmem:[#allocation17] ss:$0 sm:$0xff] }
 0x361   :  { %v3333_v7 = vpack.c.bf16 %v3330_v0, %v3330_v0 }
 0x362   :  { %v3334_v3 = vpack.c.bf16 %v3331_v1, %v3331_v1 }
 0x364   :  { %3567 = vmatprep.mubr.bf16.mxu1 %v3334_v3 }
 0x365   :  { %3568 = vmatmul.mubr.bf16.vlgmr.msra.gmra.mrb[28].mxu1 %v3333_v7 }
 0x366   :  { %4585 = vmatpush3.bf16.msra.mxu1 %v5179_v5  ;;  %4600 = vmatprep.mubr.msk.bf16.mxu1 %vm5509_vm12, %v5508_v55 }
 0x367   :  { %4586 = vmatprep.subr.bf16.mxu1 %v5508_v55 }
 0x36a   :  { %4587 = vmatpush3.bf16.msra.mxu1 %v5180_v9  ;;  %v4363_v9 = vld [vmem:[#allocation20] ss:$0 sm:$0xff] }
 0x36b   :  { %4588 = vmatprep.subr.bf16.mxu1 %v5508_v55 }
 0x36e   :  { %4589 = vmatpush3.bf16.msra.mxu1 %v5181_v13 }
 0x36f   :  { %4590 = vmatprep.subr.bf16.mxu1 %v5508_v55 }
 0x372   :  { %4591 = vmatpush3.bf16.msra.mxu1 %v5182_v54 }
 0x373   :  { %4592 = vmatprep.subr.bf16.mxu1 %v5508_v55 }
 0x376   :  { %4593 = vmatpush3.bf16.msra.mxu1 %v5183_v10 }
 0x377   :  { %4594 = vmatprep.subr.bf16.mxu1 %v5508_v55 }
 0x37a   :  { %4595 = vmatpush3.bf16.msra.mxu1 %v5184_v8 }
 0x37b   :  { %4596 = vmatprep.subr.bf16.mxu1 %v5508_v55 }
 0x37e   :  { %4597 = vmatpush3.bf16.msra.mxu1 %v5185_v11 }
 0x37f   :  { %4598 = vmatprep.subr.bf16.mxu1 %v5508_v55 }
 0x382   :  { %4599 = vmatpush3.bf16.msra.mxu1 %v5186_v43 }
 0x383   :  { %4604 = vmatprep.subr.bf16.mxu1 %v5508_v55 }
 0x385   :  { %4601 = vmatmul.mubr.bf16.vlgmr.msra.gmra.mrb[32].mxu1 %v3335_v47 }
 0x386   :  { %4620 = vmatprep.mubr.msk.bf16.mxu1 %vm5509_vm12, %v5508_v55  ;;  %4605 = vmatpush3.bf16.msra.mxu1 %v5187_v14 }
 0x387   :  { %4606 = vmatprep.subr.bf16.mxu1 %v5508_v55 }
 0x38a   :  { %4607 = vmatpush3.bf16.msra.mxu1 %v5188_v15 }
 0x38b   :  { %4608 = vmatprep.subr.bf16.mxu1 %v5508_v55 }
 0x38e   :  { %4609 = vmatpush3.bf16.msra.mxu1 %v5189_v16 }
 0x38f   :  { %4610 = vmatprep.subr.bf16.mxu1 %v5508_v55 }
 0x392   :  { %4611 = vmatpush3.bf16.msra.mxu1 %v5190_v17 }
 0x393   :  { %4612 = vmatprep.subr.bf16.mxu1 %v5508_v55 }
 0x396   :  { %4613 = vmatpush3.bf16.msra.mxu1 %v5191_v20 }
 0x397   :  { %4614 = vmatprep.subr.bf16.mxu1 %v5508_v55 }
 0x39a   :  { %4615 = vmatpush3.bf16.msra.mxu1 %v5192_v21 }
 0x39b   :  { %4616 = vmatprep.subr.bf16.mxu1 %v5508_v55 }
 0x39e   :  { %4617 = vmatpush3.bf16.msra.mxu1 %v5193_v22 }
 0x39f   :  { %4618 = vmatprep.subr.bf16.mxu1 %v5508_v55 }
 0x3a2   :  { %4619 = vmatpush3.bf16.msra.mxu1 %v5194_v23 }
 0x3a3   :  { %4624 = vmatprep.subr.bf16.mxu1 %v5508_v55 }
 0x438   :  { %v4542_v36 = vpop.f32.mrb[28].mxu1 }
 0x439   :  { %v4543_v29 = vpop.f32.mrb[29].mxu1 }
 0x43a   :  { %v4544_v24 = vadd.f32 %v4543_v29, %v4542_v36  ;;  %v4545_v39 = vpop.f32.mrb[30].mxu1 }
 0x43b   :  { %v4546_v25 = vpop.f32.mrb[31].mxu1 }
 0x43c   :  { %v3570_v6 = vadd.f32 %v4544_v24, %v4320_v26 }
 0x458   :  { %v3609_v27 = vpop.f32.mrb[32].mxu1 }
 0x459   :  { %v3610_v28 = vadd.f32 %v3609_v27, %v3570_v6  ;;  %v4602_v4 = vpop.f32.mrb[33].mxu1 }
 0x45a   :  { %v3612_v30 = vpop.f32.mrb[34].mxu1 }
 0x45b   :  { %v3615_v31 = vmax.f32 %v3610_v28, 0.0  ;;  %v4603_v32 = vpop.f32.mrb[35].mxu1 }
 0x45d   :  { %v3616_v34 = vpack.c.bf16 %v3615_v31, %v3615_v31 }
 0x45f   :  { %4621 = vmatmul.mubr.bf16.vlgmr.msra.gmra.mrb[36].mxu1 %v3616_v34 }
 0x460   :  { %4625 = vmatpush3.bf16.msra.mxu1 %v5195_v33  ;;  %4640 = vmatprep.mubr.msk.bf16.mxu1 %vm5509_vm12, %v5508_v55 }
 0x461   :  { %4626 = vmatprep.subr.bf16.mxu1 %v5508_v55 }
 0x464   :  { %4627 = vmatpush3.bf16.msra.mxu1 %v5196_v35 }
 0x465   :  { %4628 = vmatprep.subr.bf16.mxu1 %v5508_v55 }
 0x468   :  { %4629 = vmatpush3.bf16.msra.mxu1 %v5197_v37 }
 0x469   :  { %4630 = vmatprep.subr.bf16.mxu1 %v5508_v55 }
 0x46c   :  { %4631 = vmatpush3.bf16.msra.mxu1 %v5198_v18 }
 0x46d   :  { %4632 = vmatprep.subr.bf16.mxu1 %v5508_v55 }
 0x470   :  { %4633 = vmatpush3.bf16.msra.mxu1 %v5199_v38 }
 0x471   :  { %4634 = vmatprep.subr.bf16.mxu1 %v5508_v55 }
 0x474   :  { %4635 = vmatpush3.bf16.msra.mxu1 %v5200_v40 }
 0x475   :  { %4636 = vmatprep.subr.bf16.mxu1 %v5508_v55 }
 0x478   :  { %4637 = vmatpush3.bf16.msra.mxu1 %v5201_v41 }
 0x479   :  { %4638 = vmatprep.subr.bf16.mxu1 %v5508_v55 }
 0x47c   :  { %4639 = vmatpush3.bf16.msra.mxu1 %v5202_v42 }
 0x47d   :  { %4644 = vmatprep.subr.bf16.mxu1 %v5508_v55 }
 0x532   :  { %v3722_v45 = vpop.f32.mrb[36].mxu1 }
 0x533   :  { %v3723_v46 = vadd.f32 %v4345_v44, %v3722_v45  ;;  %v4622_v48 = vpop.f32.mrb[37].mxu1 }
 0x534   :  { %v3725_v49 = vpop.f32.mrb[38].mxu1 }
 0x535   :  { %v3728_v50 = vmax.f32 %v3723_v46, 0.0  ;;  %v4623_v51 = vpop.f32.mrb[39].mxu1 }
 0x537   :  { %v3729_v53 = vpack.c.bf16 %v3728_v50, %v3728_v50 }
 0x539   :  { %4641 = vmatmul.mubr.bf16.vlgmr.msra.gmra.mrb[40].mxu1 %v3729_v53 }
 0x53a   :  { %4645 = vmatpush3.bf16.msra.mxu1 %v5203_v52  ;;  %4660 = vmatprep.mubr.msk.bf16.mxu1 %vm5509_vm12, %v5508_v55 }
 0x53b   :  { %4646 = vmatprep.subr.bf16.mxu1 %v5508_v55 }
 0x53e   :  { %4647 = vmatpush3.bf16.msra.mxu1 %v5204_v56 }
 0x53f   :  { %4648 = vmatprep.subr.bf16.mxu1 %v5508_v55 }
 0x542   :  { %4649 = vmatpush3.bf16.msra.mxu1 %v5205_v19 }
 0x543   :  { %4650 = vmatprep.subr.bf16.mxu1 %v5508_v55 }
 0x546   :  { %4651 = vmatpush3.bf16.msra.mxu1 %v5206_v58 }
 0x547   :  { %4652 = vmatprep.subr.bf16.mxu1 %v5508_v55 }
 0x54a   :  { %4653 = vmatpush3.bf16.msra.mxu1 %v5207_v59 }
 0x54b   :  { %4654 = vmatprep.subr.bf16.mxu1 %v5508_v55 }
 0x54e   :  { %4655 = vmatpush3.bf16.msra.mxu1 %v5208_v57 }
 0x54f   :  { %4656 = vmatprep.subr.bf16.mxu1 %v5508_v55 }
 0x552   :  { %4657 = vmatpush3.bf16.msra.mxu1 %v5209_v60 }
 0x553   :  { %4658 = vmatprep.subr.bf16.mxu1 %v5508_v55 }
 0x556   :  { %4659 = vmatpush3.bf16.msra.mxu1 %v5210_v61 }
 0x60c   :  { %v3835_v63 = vpop.f32.mrb[40].mxu1 }
 0x60d   :  { %v3836_v0 = vadd.f32 %v4354_v62, %v3835_v63  ;;  %v4642_v2 = vpop.f32.mrb[41].mxu1 }
 0x60e   :  { %v3838_v1 = vpop.f32.mrb[42].mxu1 }
 0x60f   :  { %v3841_v3 = vmax.f32 %v3836_v0, 0.0  ;;  %v4643_v5 = vpop.f32.mrb[43].mxu1 }
 0x611   :  { %v3842_v7 = vpack.c.bf16 %v3841_v3, %v3841_v3 }
 0x613   :  { %4661 = vmatmul.mubr.bf16.vlgmr.msra.gmra.mrb[44].mxu1 %v3842_v7 }
 0x6e6   :  { %v3948_v13 = vpop.f32.mrb[44].mxu1 }
 0x6e7   :  { %v3949_v54 = vadd.f32 %v4363_v9, %v3948_v13  ;;  %v4662_v10 = vpop.f32.mrb[45].mxu1 }
 0x6e8   :  { %v3951_v55 = vpop.f32.mrb[46].mxu1 }
 0x6e9   :  { %v4663_v8 = vpop.f32.mrb[47].mxu1  ;;  %3955 = vst.msk [vmem:[#allocation21] sm:$0x3] %vm3954_vm13, %v3949_v54 }
 0x6ea   :  { %5465 = shalt.err (!%p5462_p8)
}
 0x6eb   :  { %s5466_s28 = scalar_lea.hbm %s5914_s11, 32 }
 0x6ec   :  { %p5467_p9 = scmp.ne.s32.totalorder %s5914_s11, %s5466_s28  ;;  %p5470_p10 = scmp.lt.u32.totalorder %s5466_s28, %s5914_s11 }
 0x6ee   :  { %p5472_p11 = pnand %p5470_p10, %p5467_p9 }
 0x6f0   :  { %5475 = shalt.err (!%p5472_p11)
}
 0x6f1   :  { %3965 = dma.vmem_to_hbm [thread:$0]  %s3963_s0, 32, %s5914_s11, [#allocation5]  }
 0x6f2   :  { %5488 = dma.done.wait [#allocation5], 32  }
 0x6f3   :  { %5489 = vsyncadd [#allocation5], 4294967264 }
 0x6f4   :  { %3969 = vsyncpa [#allocation4], 1 }
 0x6f5   :  { %3970 = vsyncpa [#allocation7], 1 }
 0x6f6   :  { %3971 = vsyncpa [#allocation10], 1 }
 0x6f7   :  { %3972 = vsyncpa [#allocation13], 1 }
 0x6f8   :  { %3973 = vsyncpa [#allocation16], 1 }
 0x6f9   :  { %3974 = vsyncpa [#allocation19], 1 }
 0x6fa   :  { %3975 = vsyncpa [#allocation5], 1 }

</bundles_post_ra>
